<compile_context>
chip_gen: v6e
topology: v6e:2x2x1
jax: 0.10.0
libtpu: 0.0.40
codegen_flags: <defaults>
</compile_context>

<pallas_src>
import functools
import math

import jax
import jax.numpy as jnp
import numpy as np
from jax.experimental import pallas as pl
from jax.experimental.pallas import tpu as pltpu


def _round_up(x, m):
    return (x + m - 1) // m * m


# ----------------------------- Pallas kernel -------------------------------

def _c51_fused_kernel(x_ref, w1_ref, b1_ref, w2_ref, b2_ref, *rest, training):
    """linear1 -> relu -> linear2 -> relu -> noisy1 -> relu -> noisy2
    -> fused atom-wise softmax (lane-dense output)."""
    f32 = jnp.float32

    if training:
        (w3mu_ref, w3sg_ref, w3ep_ref, b3mu_ref, b3sg_ref, b3ep_ref,
         w4mu_ref, w4sg_ref, w4ep_ref, b4mu_ref, b4sg_ref, b4ep_ref,
         seg_ref, out_ref) = rest
    else:
        (w3mu_ref, b3mu_ref, w4mu_ref, b4mu_ref, seg_ref, out_ref) = rest

    def dense(h, w, b):
        # Weights arrive already in the MXU dtype (bf16 by default); only the
        # activations are cast.  f32 accumulation, f32 bias add.
        return jnp.dot(h.astype(w.dtype), w, preferred_element_type=f32) + b

    x = x_ref[...]
    h = jnp.maximum(dense(x, w1_ref[...], b1_ref[...]), 0.0)
    h = jnp.maximum(dense(h, w2_ref[...], b2_ref[...]), 0.0)

    if training:
        # NoisyLinear effective params composed in-kernel (VPU is idle under
        # the MXU); with the large batch tile the grid has only 1-2 steps so
        # this is done at most twice per call.
        w3 = w3mu_ref[...] + w3sg_ref[...] * w3ep_ref[...]
        b3 = b3mu_ref[...] + b3sg_ref[...] * b3ep_ref[...]
        w4 = w4mu_ref[...] + w4sg_ref[...] * w4ep_ref[...]
        b4 = b4mu_ref[...] + b4sg_ref[...] * b4ep_ref[...]
    else:
        w3, b3 = w3mu_ref[...], b3mu_ref[...]
        w4, b4 = w4mu_ref[...], b4mu_ref[...]

    h = jnp.maximum(dense(h, w3, b3), 0.0)
    z = dense(h, w4, b4)          # (tb, num_actions*num_atoms), lane dense

    # Atom-wise softmax, fused without a (tb,128)->(tb*A,16) relayout:
    #   * stabilize with the per-row max (>= every per-group max, so exp can
    #     never overflow),
    #   * broadcast per-atom-group sums back via a block-diagonal ones matmul
    #     on the otherwise idle MXU (f32 for exact sums),
    #   * clamp the denominator so an all-underflowed group (logits >~88
    #     below the row max) yields 0 probabilities instead of inf/NaN,
    #   * reciprocal on the EUP (approx vrcp, ~1e-4 rel error).
    m = jnp.max(z, axis=-1, keepdims=True)                     # XLU reduce
    e = jnp.exp(z - m)                                         # EUP
    s = jnp.dot(e, seg_ref[...], preferred_element_type=f32)   # group sums
    s = jnp.maximum(s, 1e-30)
    out_ref[...] = e * pl.reciprocal(s, approx=True)


# ------------------------------ JAX wrapper --------------------------------

@functools.partial(
    jax.jit,
    static_argnums=(2, 3),
    static_argnames=("block_batch", "matmul_dtype", "training", "interpret"),
)
def categorical_network_forward(
    x, params, num_actions, num_atoms, *,
    block_batch=1024, matmul_dtype=jnp.bfloat16, training=True, interpret=False,
):
    """x: (B, num_inputs) f32 -> (B, num_actions, num_atoms) f32 distributions."""
    batch, num_inputs = x.shape
    out_dim = num_actions * num_atoms
    f32 = jnp.float32
    wdt = matmul_dtype

    # Lane-dense input: zero-pad the feature dim to a multiple of 128 (and w1
    # rows to match) so the streamed x tiles use unmasked vector loads.
    in_pad = _round_up(num_inputs, 128)
    w1 = params["w1"].astype(wdt)
    if in_pad != num_inputs:
        x = jnp.pad(x, ((0, 0), (0, in_pad - num_inputs)))
        w1 = jnp.pad(w1, ((0, in_pad - num_inputs), (0, 0)))

    # Batch tiling: big tiles (step overhead dominates at small tiles), but
    # keep >= 2 tiles whenever the batch allows it so the "parallel" batch
    # axis puts work on both of v7x's TensorCores (harmless on v5e/v6e).
    padded = _round_up(batch, 8)
    tb = min(block_batch, padded)
    if padded // tb < 2 and padded >= 16:
        tb = _round_up((padded + 1) // 2, 8)
    padded = _round_up(padded, tb)
    if padded != batch:
        x = jnp.pad(x, ((0, padded - batch), (0, 0)))
    grid = (padded // tb,)

    w2 = params["w2"].astype(wdt)
    b1, b2 = params["b1"], params["b2"]

    # Block-diagonal ones matrix: seg[i, j] = 1 iff lanes i and j belong to
    # the same atom group; e @ seg broadcasts each group's sum back to its
    # lanes.  Kept f32 so the group sums (and sums-to-1) stay exact.
    grp = jnp.arange(out_dim) // num_atoms
    seg = (grp[:, None] == grp[None, :]).astype(f32)

    if training:
        args = (
            x, w1, b1, w2, b2,
            params["w3_mu"].astype(wdt), params["w3_sigma"].astype(wdt),
            params["w3_eps"].astype(wdt),
            params["b3_mu"], params["b3_sigma"], params["b3_eps"],
            params["w4_mu"].astype(wdt), params["w4_sigma"].astype(wdt),
            params["w4_eps"].astype(wdt),
            params["b4_mu"], params["b4_sigma"], params["b4_eps"],
            seg,
        )
    else:
        # NoisyLinear eval mode (W = weight_mu, b = bias_mu): sigma / epsilon
        # tensors are not shipped to the kernel at all.
        args = (
            x, w1, b1, w2, b2,
            params["w3_mu"].astype(wdt), params["b3_mu"],
            params["w4_mu"].astype(wdt), params["b4_mu"],
            seg,
        )

    def tile_spec(cols):
        return pl.BlockSpec((tb, cols), lambda i: (i, 0))

    def resident(arr):
        # Constant block index: weights stay resident in VMEM across the grid.
        return pl.BlockSpec(arr.shape, lambda i: (0, 0))

    in_specs = [tile_spec(in_pad)] + [resident(a) for a in args[1:]]

    kernel = functools.partial(_c51_fused_kernel, training=training)
    probs = pl.pallas_call(
        kernel,
        out_shape=jax.ShapeDtypeStruct((padded, out_dim), jnp.float32),
        grid=grid,
        in_specs=in_specs,
        out_specs=tile_spec(out_dim),
        compiler_params=pltpu.CompilerParams(
            # batch axis is embarrassingly parallel -> sharded across v7x's
            # two TensorCores; harmless on single-TC v5e/v6e.
            dimension_semantics=("parallel",),
            vmem_limit_bytes=32 * 1024 * 1024,
        ),
        interpret=interpret,
    )(*args)

    return probs[:batch].reshape(batch, num_actions, num_atoms)


# --------------------------- parameter construction ------------------------

def _scale_noise(key, size):
    x = jax.random.normal(key, (size,), jnp.float32)
    return jnp.sign(x) * jnp.sqrt(jnp.abs(x))


def _linear_params(key, fan_in, fan_out):
    kw, kb = jax.random.split(key)
    bound = 1.0 / math.sqrt(fan_in)
    w = jax.random.uniform(kw, (fan_in, fan_out), jnp.float32, -bound, bound)
    b = jax.random.uniform(kb, (1, fan_out), jnp.float32, -bound, bound)
    return w, b


def _noisy_linear_params(key, fan_in, fan_out, std_init=0.4):
    kmu_w, kmu_b, keps_in, keps_out, keps_b = jax.random.split(key, 5)
    mu_range = 1.0 / math.sqrt(fan_in)
    weight_mu = jax.random.uniform(kmu_w, (fan_in, fan_out), jnp.float32,
                                   -mu_range, mu_range)
    bias_mu = jax.random.uniform(kmu_b, (1, fan_out), jnp.float32,
                                 -mu_range, mu_range)
    weight_sigma = jnp.full((fan_in, fan_out), std_init / math.sqrt(fan_in),
                            jnp.float32)
    bias_sigma = jnp.full((1, fan_out), std_init / math.sqrt(fan_out),
                          jnp.float32)
    eps_in = _scale_noise(keps_in, fan_in)
    eps_out = _scale_noise(keps_out, fan_out)
    weight_eps = jnp.outer(eps_in, eps_out)        # (in,out) view of ger(out,in)
    bias_eps = _scale_noise(keps_b, fan_out)[None, :]
    return dict(mu=weight_mu, sigma=weight_sigma, eps=weight_eps,
                b_mu=bias_mu, b_sigma=bias_sigma, b_eps=bias_eps)


def init_params(key, num_inputs, num_actions, num_atoms):
    k1, k2, k3, k4 = jax.random.split(key, 4)
    w1, b1 = _linear_params(k1, num_inputs, 128)
    w2, b2 = _linear_params(k2, 128, 128)
    n1 = _noisy_linear_params(k3, 128, 512)
    n2 = _noisy_linear_params(k4, 512, num_actions * num_atoms)
    return dict(
        w1=w1, b1=b1, w2=w2, b2=b2,
        w3_mu=n1["mu"], w3_sigma=n1["sigma"], w3_eps=n1["eps"],
        b3_mu=n1["b_mu"], b3_sigma=n1["b_sigma"], b3_eps=n1["b_eps"],
        w4_mu=n2["mu"], w4_sigma=n2["sigma"], w4_eps=n2["eps"],
        b4_mu=n2["b_mu"], b4_sigma=n2["b_sigma"], b4_eps=n2["b_eps"],
    )


# ------------------------------ pure-JAX reference -------------------------

def reference_forward(x, params, num_actions, num_atoms, training=True):
    s = 1.0 if training else 0.0
    h = jax.nn.relu(x @ params["w1"] + params["b1"])
    h = jax.nn.relu(h @ params["w2"] + params["b2"])
    w3 = params["w3_mu"] + s * params["w3_sigma"] * params["w3_eps"]
    b3 = params["b3_mu"] + s * params["b3_sigma"] * params["b3_eps"]
    h = jax.nn.relu(h @ w3 + b3)
    w4 = params["w4_mu"] + s * params["w4_sigma"] * params["w4_eps"]
    b4 = params["b4_mu"] + s * params["b4_sigma"] * params["b4_eps"]
    z = h @ w4 + b4
    p = jax.nn.softmax(z.reshape(-1, num_atoms), axis=-1)
    return p.reshape(x.shape[0], num_actions, num_atoms)


# ---------------------------------- main ------------------------------------

if __name__ == "__main__":
    batch = 256          # >=128 rows per tile so the MXU M dimension is filled
    num_inputs = 32
    num_actions = 8
    num_atoms = 16       # num_actions * num_atoms = 128 -> lane-dense output

    key = jax.random.PRNGKey(0)
    kx, kp = jax.random.split(key)
    x = jax.random.normal(kx, (batch, num_inputs), jnp.float32)
    params = init_params(kp, num_inputs, num_actions, num_atoms)

    # training-mode forward (noisy weights composed in-kernel)
    out = categorical_network_forward(x, params, num_actions, num_atoms)
    out = jax.block_until_ready(out)

    assert out.shape == (batch, num_actions, num_atoms)
    out_np = np.asarray(out)
    # valid distributions over atoms (tolerance covers MXU pass + approx recip)
    assert np.all(out_np >= 0.0)
    assert float(np.max(np.abs(out_np.sum(axis=-1) - 1.0))) < 5e-3

    # numerics check against a plain-JAX f32 reference (generous tolerance
    # because the kernel stores/composes the weights in bf16 per perf review)
    ref = np.asarray(reference_forward(x, params, num_actions, num_atoms))
    assert float(np.max(np.abs(out_np - ref))) < 3e-2

    # eval-mode forward (static branch: no epsilon DMA, no sigma*eps FMA)
    out_eval = categorical_network_forward(x, params, num_actions, num_atoms,
                                           training=False)
    out_eval = jax.block_until_ready(out_eval)
    ref_eval = np.asarray(reference_forward(x, params, num_actions, num_atoms,
                                            training=False))
    assert float(np.max(np.abs(np.asarray(out_eval) - ref_eval))) < 3e-2

    print("KERNEL_OK")
</pallas_src>

<mosaic_0001>
module attributes {stable_mosaic.version = 11 : i64} {
  func.func @_c51_fused_kernel(%arg0: i32, %arg1: memref<128x128xf32, #tpu.memory_space<vmem>>, %arg2: memref<128x128xbf16, #tpu.memory_space<vmem>>, %arg3: memref<1x128xf32, #tpu.memory_space<vmem>>, %arg4: memref<128x128xbf16, #tpu.memory_space<vmem>>, %arg5: memref<1x128xf32, #tpu.memory_space<vmem>>, %arg6: memref<128x512xbf16, #tpu.memory_space<vmem>>, %arg7: memref<128x512xbf16, #tpu.memory_space<vmem>>, %arg8: memref<128x512xbf16, #tpu.memory_space<vmem>>, %arg9: memref<1x512xf32, #tpu.memory_space<vmem>>, %arg10: memref<1x512xf32, #tpu.memory_space<vmem>>, %arg11: memref<1x512xf32, #tpu.memory_space<vmem>>, %arg12: memref<512x128xbf16, #tpu.memory_space<vmem>>, %arg13: memref<512x128xbf16, #tpu.memory_space<vmem>>, %arg14: memref<512x128xbf16, #tpu.memory_space<vmem>>, %arg15: memref<1x128xf32, #tpu.memory_space<vmem>>, %arg16: memref<1x128xf32, #tpu.memory_space<vmem>>, %arg17: memref<1x128xf32, #tpu.memory_space<vmem>>, %arg18: memref<128x128xf32, #tpu.memory_space<vmem>>, %arg19: memref<128x128xf32, #tpu.memory_space<vmem>>) attributes {dimension_semantics = [#tpu.dimension_semantics<parallel>], iteration_bounds = array<i64: 2>, scalar_prefetch = 0 : i64, scratch_operands = 0 : i64, tpu.core_type = #tpu.core_type<tc>, window_params = [{transform_indices = @transform_0, window_bounds = array<i64: 128, 128>}, {pipeline_mode = #tpu.pipeline_mode<synchronous>, transform_indices = @transform_1, window_bounds = array<i64: 128, 128>}, {pipeline_mode = #tpu.pipeline_mode<synchronous>, transform_indices = @transform_2, window_bounds = array<i64: 1, 128>}, {pipeline_mode = #tpu.pipeline_mode<synchronous>, transform_indices = @transform_3, window_bounds = array<i64: 128, 128>}, {pipeline_mode = #tpu.pipeline_mode<synchronous>, transform_indices = @transform_4, window_bounds = array<i64: 1, 128>}, {pipeline_mode = #tpu.pipeline_mode<synchronous>, transform_indices = @transform_5, window_bounds = array<i64: 128, 512>}, {pipeline_mode = #tpu.pipeline_mode<synchronous>, transform_indices = @transform_6, window_bounds = array<i64: 128, 512>}, {pipeline_mode = #tpu.pipeline_mode<synchronous>, transform_indices = @transform_7, window_bounds = array<i64: 128, 512>}, {pipeline_mode = #tpu.pipeline_mode<synchronous>, transform_indices = @transform_8, window_bounds = array<i64: 1, 512>}, {pipeline_mode = #tpu.pipeline_mode<synchronous>, transform_indices = @transform_9, window_bounds = array<i64: 1, 512>}, {pipeline_mode = #tpu.pipeline_mode<synchronous>, transform_indices = @transform_10, window_bounds = array<i64: 1, 512>}, {pipeline_mode = #tpu.pipeline_mode<synchronous>, transform_indices = @transform_11, window_bounds = array<i64: 512, 128>}, {pipeline_mode = #tpu.pipeline_mode<synchronous>, transform_indices = @transform_12, window_bounds = array<i64: 512, 128>}, {pipeline_mode = #tpu.pipeline_mode<synchronous>, transform_indices = @transform_13, window_bounds = array<i64: 512, 128>}, {pipeline_mode = #tpu.pipeline_mode<synchronous>, transform_indices = @transform_14, window_bounds = array<i64: 1, 128>}, {pipeline_mode = #tpu.pipeline_mode<synchronous>, transform_indices = @transform_15, window_bounds = array<i64: 1, 128>}, {pipeline_mode = #tpu.pipeline_mode<synchronous>, transform_indices = @transform_16, window_bounds = array<i64: 1, 128>}, {pipeline_mode = #tpu.pipeline_mode<synchronous>, transform_indices = @transform_17, window_bounds = array<i64: 128, 128>}, {transform_indices = @transform_18, window_bounds = array<i64: 128, 128>}]} {
    %c0 = arith.constant 0 : index
    %c0_0 = arith.constant 0 : index
    %0 = vector.load %arg1[%c0, %c0_0] : memref<128x128xf32, #tpu.memory_space<vmem>>, vector<128x128xf32>
    %c0_1 = arith.constant 0 : index
    %c0_2 = arith.constant 0 : index
    %1 = vector.load %arg2[%c0_1, %c0_2] : memref<128x128xbf16, #tpu.memory_space<vmem>>, vector<128x128xbf16>
    %c0_3 = arith.constant 0 : index
    %c0_4 = arith.constant 0 : index
    %2 = vector.load %arg3[%c0_3, %c0_4] : memref<1x128xf32, #tpu.memory_space<vmem>>, vector<1x128xf32>
    %3 = arith.truncf %0 : vector<128x128xf32> to vector<128x128xbf16>
    %cst = arith.constant dense<0.000000e+00> : vector<128x128xf32>
    %4 = tpu.matmul %3, %1, %cst {dimension_numbers = #tpu.dot_dimension_numbers<[1], [0], [0], [1], [0, 0, 1, 1], [], []>} : vector<128x128xbf16>, vector<128x128xbf16>, vector<128x128xf32> -> vector<128x128xf32>
    %5 = vector.broadcast %2 : vector<1x128xf32> to vector<128x128xf32>
    %6 = arith.addf %4, %5 : vector<128x128xf32>
    %cst_5 = arith.constant 0.000000e+00 : f32
    %7 = vector.broadcast %cst_5 : f32 to vector<128x128xf32>
    %8 = arith.maximumf %6, %7 : vector<128x128xf32>
    %c0_6 = arith.constant 0 : index
    %c0_7 = arith.constant 0 : index
    %9 = vector.load %arg4[%c0_6, %c0_7] : memref<128x128xbf16, #tpu.memory_space<vmem>>, vector<128x128xbf16>
    %c0_8 = arith.constant 0 : index
    %c0_9 = arith.constant 0 : index
    %10 = vector.load %arg5[%c0_8, %c0_9] : memref<1x128xf32, #tpu.memory_space<vmem>>, vector<1x128xf32>
    %11 = arith.truncf %8 : vector<128x128xf32> to vector<128x128xbf16>
    %cst_10 = arith.constant dense<0.000000e+00> : vector<128x128xf32>
    %12 = tpu.matmul %11, %9, %cst_10 {dimension_numbers = #tpu.dot_dimension_numbers<[1], [0], [0], [1], [0, 0, 1, 1], [], []>} : vector<128x128xbf16>, vector<128x128xbf16>, vector<128x128xf32> -> vector<128x128xf32>
    %13 = vector.broadcast %10 : vector<1x128xf32> to vector<128x128xf32>
    %14 = arith.addf %12, %13 : vector<128x128xf32>
    %cst_11 = arith.constant 0.000000e+00 : f32
    %15 = vector.broadcast %cst_11 : f32 to vector<128x128xf32>
    %16 = arith.maximumf %14, %15 : vector<128x128xf32>
    %c0_12 = arith.constant 0 : index
    %c0_13 = arith.constant 0 : index
    %17 = vector.load %arg6[%c0_12, %c0_13] : memref<128x512xbf16, #tpu.memory_space<vmem>>, vector<128x512xbf16>
    %c0_14 = arith.constant 0 : index
    %c0_15 = arith.constant 0 : index
    %18 = vector.load %arg7[%c0_14, %c0_15] : memref<128x512xbf16, #tpu.memory_space<vmem>>, vector<128x512xbf16>
    %c0_16 = arith.constant 0 : index
    %c0_17 = arith.constant 0 : index
    %19 = vector.load %arg8[%c0_16, %c0_17] : memref<128x512xbf16, #tpu.memory_space<vmem>>, vector<128x512xbf16>
    %20 = arith.mulf %18, %19 : vector<128x512xbf16>
    %21 = arith.addf %17, %20 : vector<128x512xbf16>
    %c0_18 = arith.constant 0 : index
    %c0_19 = arith.constant 0 : index
    %22 = vector.load %arg9[%c0_18, %c0_19] : memref<1x512xf32, #tpu.memory_space<vmem>>, vector<1x512xf32>
    %c0_20 = arith.constant 0 : index
    %c0_21 = arith.constant 0 : index
    %23 = vector.load %arg10[%c0_20, %c0_21] : memref<1x512xf32, #tpu.memory_space<vmem>>, vector<1x512xf32>
    %c0_22 = arith.constant 0 : index
    %c0_23 = arith.constant 0 : index
    %24 = vector.load %arg11[%c0_22, %c0_23] : memref<1x512xf32, #tpu.memory_space<vmem>>, vector<1x512xf32>
    %25 = arith.mulf %23, %24 : vector<1x512xf32>
    %26 = arith.addf %22, %25 : vector<1x512xf32>
    %c0_24 = arith.constant 0 : index
    %c0_25 = arith.constant 0 : index
    %27 = vector.load %arg12[%c0_24, %c0_25] : memref<512x128xbf16, #tpu.memory_space<vmem>>, vector<512x128xbf16>
    %c0_26 = arith.constant 0 : index
    %c0_27 = arith.constant 0 : index
    %28 = vector.load %arg13[%c0_26, %c0_27] : memref<512x128xbf16, #tpu.memory_space<vmem>>, vector<512x128xbf16>
    %c0_28 = arith.constant 0 : index
    %c0_29 = arith.constant 0 : index
    %29 = vector.load %arg14[%c0_28, %c0_29] : memref<512x128xbf16, #tpu.memory_space<vmem>>, vector<512x128xbf16>
    %30 = arith.mulf %28, %29 : vector<512x128xbf16>
    %31 = arith.addf %27, %30 : vector<512x128xbf16>
    %c0_30 = arith.constant 0 : index
    %c0_31 = arith.constant 0 : index
    %32 = vector.load %arg15[%c0_30, %c0_31] : memref<1x128xf32, #tpu.memory_space<vmem>>, vector<1x128xf32>
    %c0_32 = arith.constant 0 : index
    %c0_33 = arith.constant 0 : index
    %33 = vector.load %arg16[%c0_32, %c0_33] : memref<1x128xf32, #tpu.memory_space<vmem>>, vector<1x128xf32>
    %c0_34 = arith.constant 0 : index
    %c0_35 = arith.constant 0 : index
    %34 = vector.load %arg17[%c0_34, %c0_35] : memref<1x128xf32, #tpu.memory_space<vmem>>, vector<1x128xf32>
    %35 = arith.mulf %33, %34 : vector<1x128xf32>
    %36 = arith.addf %32, %35 : vector<1x128xf32>
    %37 = arith.truncf %16 : vector<128x128xf32> to vector<128x128xbf16>
    %cst_36 = arith.constant dense<0.000000e+00> : vector<128x512xf32>
    %38 = tpu.matmul %37, %21, %cst_36 {dimension_numbers = #tpu.dot_dimension_numbers<[1], [0], [0], [1], [0, 0, 1, 1], [], []>} : vector<128x128xbf16>, vector<128x512xbf16>, vector<128x512xf32> -> vector<128x512xf32>
    %39 = vector.broadcast %26 : vector<1x512xf32> to vector<128x512xf32>
    %40 = arith.addf %38, %39 : vector<128x512xf32>
    %cst_37 = arith.constant 0.000000e+00 : f32
    %41 = vector.broadcast %cst_37 : f32 to vector<128x512xf32>
    %42 = arith.maximumf %40, %41 : vector<128x512xf32>
    %43 = arith.truncf %42 : vector<128x512xf32> to vector<128x512xbf16>
    %cst_38 = arith.constant dense<0.000000e+00> : vector<128x128xf32>
    %44 = tpu.matmul %43, %31, %cst_38 {dimension_numbers = #tpu.dot_dimension_numbers<[1], [0], [0], [1], [0, 0, 1, 1], [], []>} : vector<128x512xbf16>, vector<512x128xbf16>, vector<128x128xf32> -> vector<128x128xf32>
    %45 = vector.broadcast %36 : vector<1x128xf32> to vector<128x128xf32>
    %46 = arith.addf %44, %45 : vector<128x128xf32>
    %cst_39 = arith.constant dense<0xFF800000> : vector<128xf32>
    %47 = vector.multi_reduction <maximumf>, %46, %cst_39 [1] : vector<128x128xf32> to vector<128xf32>
    %48 = vector.shape_cast %47 : vector<128xf32> to vector<128x1xf32>
    %49 = vector.broadcast %48 : vector<128x1xf32> to vector<128x128xf32>
    %50 = arith.subf %46, %49 : vector<128x128xf32>
    %51 = math.exp %50 : vector<128x128xf32>
    %c0_40 = arith.constant 0 : index
    %c0_41 = arith.constant 0 : index
    %52 = vector.load %arg18[%c0_40, %c0_41] : memref<128x128xf32, #tpu.memory_space<vmem>>, vector<128x128xf32>
    %cst_42 = arith.constant dense<0.000000e+00> : vector<128x128xf32>
    %53 = tpu.matmul %51, %52, %cst_42 {dimension_numbers = #tpu.dot_dimension_numbers<[1], [0], [0], [1], [0, 0, 1, 1], [], []>} : vector<128x128xf32>, vector<128x128xf32>, vector<128x128xf32> -> vector<128x128xf32>
    %cst_43 = arith.constant 1.000000e-30 : f32
    %54 = vector.broadcast %cst_43 : f32 to vector<128x128xf32>
    %55 = arith.maximumf %53, %54 : vector<128x128xf32>
    %56 = tpu.reciprocal %55 {approx = true} : vector<128x128xf32> -> vector<128x128xf32>
    %57 = arith.mulf %51, %56 : vector<128x128xf32>
    %c0_44 = arith.constant 0 : index
    %c0_45 = arith.constant 0 : index
    %58 = vector.load %arg19[%c0_44, %c0_45] : memref<128x128xf32, #tpu.memory_space<vmem>>, vector<128x128xf32>
    tpu.vector_store %arg19[%c0_44, %c0_45], %57 {strides = array<i32>} : memref<128x128xf32, #tpu.memory_space<vmem>>, vector<128x128xf32>,
    return
  }
  func.func @transform_0(%arg0: i32) -> (i32, i32) {
    %c0_i32 = arith.constant 0 : i32
    %c0_i32_0 = arith.constant 0 : i32
    return %arg0, %c0_i32 : i32, i32
  }
  func.func @transform_1(%arg0: i32) -> (i32, i32) {
    %c0_i32 = arith.constant 0 : i32
    %c0_i32_0 = arith.constant 0 : i32
    %c0_i32_1 = arith.constant 0 : i32
    return %c0_i32, %c0_i32_0 : i32, i32
  }
  func.func @transform_2(%arg0: i32) -> (i32, i32) {
    %c0_i32 = arith.constant 0 : i32
    %c0_i32_0 = arith.constant 0 : i32
    %c0_i32_1 = arith.constant 0 : i32
    return %c0_i32, %c0_i32_0 : i32, i32
  }
  func.func @transform_3(%arg0: i32) -> (i32, i32) {
    %c0_i32 = arith.constant 0 : i32
    %c0_i32_0 = arith.constant 0 : i32
    %c0_i32_1 = arith.constant 0 : i32
    return %c0_i32, %c0_i32_0 : i32, i32
  }
  func.func @transform_4(%arg0: i32) -> (i32, i32) {
    %c0_i32 = arith.constant 0 : i32
    %c0_i32_0 = arith.constant 0 : i32
    %c0_i32_1 = arith.constant 0 : i32
    return %c0_i32, %c0_i32_0 : i32, i32
  }
  func.func @transform_5(%arg0: i32) -> (i32, i32) {
    %c0_i32 = arith.constant 0 : i32
    %c0_i32_0 = arith.constant 0 : i32
    %c0_i32_1 = arith.constant 0 : i32
    return %c0_i32, %c0_i32_0 : i32, i32
  }
  func.func @transform_6(%arg0: i32) -> (i32, i32) {
    %c0_i32 = arith.constant 0 : i32
    %c0_i32_0 = arith.constant 0 : i32
    %c0_i32_1 = arith.constant 0 : i32
    return %c0_i32, %c0_i32_0 : i32, i32
  }
  func.func @transform_7(%arg0: i32) -> (i32, i32) {
    %c0_i32 = arith.constant 0 : i32
    %c0_i32_0 = arith.constant 0 : i32
    %c0_i32_1 = arith.constant 0 : i32
    return %c0_i32, %c0_i32_0 : i32, i32
  }
  func.func @transform_8(%arg0: i32) -> (i32, i32) {
    %c0_i32 = arith.constant 0 : i32
    %c0_i32_0 = arith.constant 0 : i32
    %c0_i32_1 = arith.constant 0 : i32
    return %c0_i32, %c0_i32_0 : i32, i32
  }
  func.func @transform_9(%arg0: i32) -> (i32, i32) {
    %c0_i32 = arith.constant 0 : i32
    %c0_i32_0 = arith.constant 0 : i32
    %c0_i32_1 = arith.constant 0 : i32
    return %c0_i32, %c0_i32_0 : i32, i32
  }
  func.func @transform_10(%arg0: i32) -> (i32, i32) {
    %c0_i32 = arith.constant 0 : i32
    %c0_i32_0 = arith.constant 0 : i32
    %c0_i32_1 = arith.constant 0 : i32
    return %c0_i32, %c0_i32_0 : i32, i32
  }
  func.func @transform_11(%arg0: i32) -> (i32, i32) {
    %c0_i32 = arith.constant 0 : i32
    %c0_i32_0 = arith.constant 0 : i32
    %c0_i32_1 = arith.constant 0 : i32
    return %c0_i32, %c0_i32_0 : i32, i32
  }
  func.func @transform_12(%arg0: i32) -> (i32, i32) {
    %c0_i32 = arith.constant 0 : i32
    %c0_i32_0 = arith.constant 0 : i32
    %c0_i32_1 = arith.constant 0 : i32
    return %c0_i32, %c0_i32_0 : i32, i32
  }
  func.func @transform_13(%arg0: i32) -> (i32, i32) {
    %c0_i32 = arith.constant 0 : i32
    %c0_i32_0 = arith.constant 0 : i32
    %c0_i32_1 = arith.constant 0 : i32
    return %c0_i32, %c0_i32_0 : i32, i32
  }
  func.func @transform_14(%arg0: i32) -> (i32, i32) {
    %c0_i32 = arith.constant 0 : i32
    %c0_i32_0 = arith.constant 0 : i32
    %c0_i32_1 = arith.constant 0 : i32
    return %c0_i32, %c0_i32_0 : i32, i32
  }
  func.func @transform_15(%arg0: i32) -> (i32, i32) {
    %c0_i32 = arith.constant 0 : i32
    %c0_i32_0 = arith.constant 0 : i32
    %c0_i32_1 = arith.constant 0 : i32
    return %c0_i32, %c0_i32_0 : i32, i32
  }
  func.func @transform_16(%arg0: i32) -> (i32, i32) {
    %c0_i32 = arith.constant 0 : i32
    %c0_i32_0 = arith.constant 0 : i32
    %c0_i32_1 = arith.constant 0 : i32
    return %c0_i32, %c0_i32_0 : i32, i32
  }
  func.func @transform_17(%arg0: i32) -> (i32, i32) {
    %c0_i32 = arith.constant 0 : i32
    %c0_i32_0 = arith.constant 0 : i32
    %c0_i32_1 = arith.constant 0 : i32
    return %c0_i32, %c0_i32_0 : i32, i32
  }
  func.func @transform_18(%arg0: i32) -> (i32, i32) {
    %c0_i32 = arith.constant 0 : i32
    %c0_i32_0 = arith.constant 0 : i32
    return %arg0, %c0_i32 : i32, i32
  }
}

</mosaic_0001>

<bundles_post_ra>
// kernel: categorical_network_forward.1
= control target key start
LH: loop header
LB: loop body
LE: loop exit
PB: predicated region body
PF: predicated region fallthrough
CT: control target
= control target key end

     0   :  { %s3364_s27 = smov 0   ;;  %s5032_s0 = inlined_call_operand.vmem [shape: f32[256,128], index: 0, kind: input, shape index: {}]   ;;  %s5033_s1 = inlined_call_operand.vmem [shape: bf16[128,128], index: 1, kind: input, shape index: {}]   ;;  %s5034_s2 = inlined_call_operand.vmem [shape: f32[1,128], index: 2, kind: input, shape index: {}]   ;;  %s5035_s3 = inlined_call_operand.vmem [shape: bf16[128,128], index: 3, kind: input, shape index: {}]   ;;  %s5036_s4 = inlined_call_operand.vmem [shape: f32[1,128], index: 4, kind: input, shape index: {}]   ;;  %s5037_s5 = inlined_call_operand.vmem [shape: bf16[128,512], index: 5, kind: input, shape index: {}]   ;;  %s5038_s6 = inlined_call_operand.vmem [shape: bf16[128,512], index: 6, kind: input, shape index: {}]   ;;  %s5039_s7 = inlined_call_operand.vmem [shape: bf16[128,512], index: 7, kind: input, shape index: {}]   ;;  %s5040_s8 = inlined_call_operand.vmem [shape: f32[1,512], index: 8, kind: input, shape index: {}]   ;;  %s5041_s9 = inlined_call_operand.vmem [shape: f32[1,512], index: 9, kind: input, shape index: {}]   ;;  %s5042_s10 = inlined_call_operand.vmem [shape: f32[1,512], index: 10, kind: input, shape index: {}]   ;;  %s5043_s11 = inlined_call_operand.vmem [shape: bf16[512,128], index: 11, kind: input, shape index: {}]   ;;  %s5044_s12 = inlined_call_operand.vmem [shape: bf16[512,128], index: 12, kind: input, shape index: {}]   ;;  %s5045_s13 = inlined_call_operand.vmem [shape: bf16[512,128], index: 13, kind: input, shape index: {}]   ;;  %s5046_s14 = inlined_call_operand.vmem [shape: f32[1,128], index: 14, kind: input, shape index: {}]   ;;  %s5047_s15 = inlined_call_operand.vmem [shape: f32[1,128], index: 15, kind: input, shape index: {}]   ;;  %s5048_s16 = inlined_call_operand.vmem [shape: f32[1,128], index: 16, kind: input, shape index: {}]   ;;  %s5049_s17 = inlined_call_operand.vmem [shape: f32[128,128], index: 17, kind: input, shape index: {}]   ;;  %s5050_s18 = inlined_call_operand.vmem [shape: f32[256,128], index: 18, kind: output, shape index: {}]  }
   0x1   :  { %5053 = sst [smem:[#allocation2_spill]] %s5032_s0 }
   0x2   :  { %5054 = sst [smem:[#allocation3_spill]] %s5033_s1 }
   0x3   :  { %5055 = sst [smem:[#allocation4_spill]] %s5034_s2 }
   0x4 LB: > { %s2734_s28 = sadd.s32 4294967295, %s3266_s27   ;;  %p2738_p0 = scmp.ge.s32.totalorder %s3266_s27, 1  ;;  %s3266_s27 = sphi %s3364_s27, %s28_s27  }
   0x5   : > { %p513_p1 = scmp.lt.s32.totalorder %s3266_s27, 3 }
   0x7   : > { %p514_p2 = pnand %p2738_p0, %p513_p1 }
   0x8   : > { %s5056_s0 = sld [smem:[#allocation3_spill]] (!%p514_p2)  ;;  %s2739_s19 = sshll.u32 (!%p514_p2), %s2734_s28, 4 }
   0x9   : > { %517 = sbr.rel (%p514_p2) target bundleno = 1295 (0x50f), region = 92  ;;  %p568_p3 = scmp.lt.s32.totalorder (!%p514_p2), %s2739_s19, 31 }
   0xa   : > { %s5057_s25 = sld [smem:[#allocation2_spill]] (!%p514_p2) }
   0xb   : > { %s5058_s20 = sld [smem:[#allocation4_spill]] (!%p514_p2) }
   0xe   : > { %v3180_v0 = vld [vmem:[%s5056_s0 + $0x38] sm:$0xff]   ;;  %v3181_v1 = vld [vmem:[%s5056_s0 + $0x30] sm:$0xff]   ;;  %s5071_s19 = smov (!%p568_p3, %s2739_s19), 31  ;;  %v3182_v2 = vld [vmem:[%s5056_s0 + $0x28] sm:$0xff]  }
   0xf   : > { %3019 = vmatprep.subr.bf16.mxu0 %v3180_v0  ;;  %s5052_s2 = sshll.u32 %s5071_s19, 3  ;;  %v3183_v3 = vld [vmem:[%s5056_s0 + $0x20] sm:$0xff]   ;;  %v3184_v7 = vld [vmem:[%s5056_s0 + $0x18] sm:$0xff]   ;;  %v3189_v9 = vld [vmem:[%s5035_s3 + $0x30] sm:$0xff]   ;;  %s5069_s22 = sshll.u32 %s5071_s19, 3 }
  0x10   : > { %3020 = vmatpush3.bf16.msra.mxu0 %v3180_v0  ;;  %s3389_s26 = scalar_lea.vmem %s5057_s25, %s5052_s2  ;;  %v3188_v8 = vld [vmem:[%s5035_s3 + $0x38] sm:$0xff]   ;;  %v3185_v10 = vld [vmem:[%s5056_s0 + $0x10] sm:$0xff]   ;;  %v3190_v11 = vld [vmem:[%s5035_s3 + $0x28] sm:$0xff]   ;;  %s4995_s25 = scalar_lea.vmem %s5050_s18, %s5069_s22 }
  0x11   : > { %3021 = vmatprep.subr.bf16.mxu0 %v3181_v1  ;;  %v580_v4 = vld [vmem:[%s3389_s26] sm:$0xff]  ;;  %v581_v5 = vld [vmem:[%s3389_s26 + $0x8] sm:$0xff]  ;;  %3051 = vmatprep.subr.bf16.mxu1 %v3188_v8  ;;  %v3192_v15 = vld [vmem:[%s5035_s3 + $0x18] sm:$0xff]  }
  0x12   : > { %v613_v6 = vpack.c.bf16 %v581_v5, %v580_v4  ;;  %3052 = vmatpush3.bf16.msra.mxu1 %v3188_v8  ;;  %v3186_v12 = vld [vmem:[%s5056_s0 + $0x8] sm:$0xff]   ;;  %v3191_v13 = vld [vmem:[%s5035_s3 + $0x20] sm:$0xff]   ;;  %v582_v16 = vld [vmem:[%s3389_s26 + $0x10] sm:$0xff] }
  0x13   : > { %3053 = vmatprep.subr.bf16.mxu1 %v3189_v9  ;;  %v3187_v14 = vld [vmem:[%s5056_s0] sm:$0xff]   ;;  %v583_v17 = vld [vmem:[%s3389_s26 + $0x18] sm:$0xff]  ;;  %v585_v19 = vld [vmem:[%s3389_s26 + $0x28] sm:$0xff] }
  0x14   : > { %3022 = vmatpush3.bf16.msra.mxu0 %v3181_v1  ;;  %3035 = vmatprep.mubr.bf16.mxu0 %v613_v6  ;;  %v584_v18 = vld [vmem:[%s3389_s26 + $0x20] sm:$0xff]  ;;  %v614_v20 = vpack.c.bf16 %v583_v17, %v582_v16  ;;  %v586_v22 = vld [vmem:[%s3389_s26 + $0x30] sm:$0xff]  ;;  %v587_v23 = vld [vmem:[%s3389_s26 + $0x38] sm:$0xff] }
  0x15   : > { %3023 = vmatprep.subr.bf16.mxu0 %v3182_v2  ;;  %v615_v21 = vpack.c.bf16 %v585_v19, %v584_v18  ;;  %v588_v24 = vld [vmem:[%s3389_s26 + $0x40] sm:$0xff]  ;;  %v589_v25 = vld [vmem:[%s3389_s26 + $0x48] sm:$0xff]  ;;  %v616_v26 = vpack.c.bf16 %v587_v23, %v586_v22  ;;  %v590_v28 = vld [vmem:[%s3389_s26 + $0x50] sm:$0xff] }
  0x16   : > { %3054 = vmatpush3.bf16.msra.mxu1 %v3189_v9  ;;  %v617_v27 = vpack.c.bf16 %v589_v25, %v588_v24  ;;  %v591_v29 = vld [vmem:[%s3389_s26 + $0x58] sm:$0xff]  ;;  %v592_v30 = vld [vmem:[%s3389_s26 + $0x60] sm:$0xff]  ;;  %v593_v31 = vld [vmem:[%s3389_s26 + $0x68] sm:$0xff] }
  0x17   : > { %3055 = vmatprep.subr.bf16.mxu1 %v3190_v11  ;;  %v618_v32 = vpack.c.bf16 %v591_v29, %v590_v28  ;;  %v619_v33 = vpack.c.bf16 %v593_v31, %v592_v30  ;;  %v594_v34 = vld [vmem:[%s3389_s26 + $0x70] sm:$0xff]  ;;  %v595_v35 = vld [vmem:[%s3389_s26 + $0x78] sm:$0xff]  ;;  %v3194_v38 = vld [vmem:[%s5035_s3 + $0x8] sm:$0xff]  }
  0x18   : > { %3024 = vmatpush3.bf16.msra.mxu0 %v3182_v2  ;;  %v620_v36 = vpack.c.bf16 %v595_v35, %v594_v34  ;;  %v3193_v37 = vld [vmem:[%s5035_s3 + $0x10] sm:$0xff]   ;;  %v3195_v39 = vld [vmem:[%s5035_s3] sm:$0xff]   ;;  %v1009_v48 = vld [vmem:[%s5037_s5 + $0xe8] sm:$0xff] }
  0x19   : > { %3025 = vmatprep.subr.bf16.mxu0 %v3183_v3  ;;  %v1008_v40 = vld [vmem:[%s5037_s5 + $0xe0] sm:$0xff]  ;;  %v1010_v41 = vld [vmem:[%s5037_s5 + $0xf0] sm:$0xff]  ;;  %v1011_v49 = vld [vmem:[%s5037_s5 + $0xf8] sm:$0xff] }
  0x1a   : > { %3056 = vmatpush3.bf16.msra.mxu1 %v3190_v11  ;;  %v1040_v42 = vld [vmem:[%s5038_s6 + $0xe0] sm:$0xff]  ;;  %v1042_v43 = vld [vmem:[%s5038_s6 + $0xf0] sm:$0xff]  ;;  %v1041_v50 = vld [vmem:[%s5038_s6 + $0xe8] sm:$0xff] }
  0x1b   : > { %3057 = vmatprep.subr.bf16.mxu1 %v3191_v13  ;;  %v1072_v44 = vld [vmem:[%s5039_s7 + $0xe0] sm:$0xff]  ;;  %v1074_v45 = vld [vmem:[%s5039_s7 + $0xf0] sm:$0xff]  ;;  %v1043_v51 = vld [vmem:[%s5038_s6 + $0xf8] sm:$0xff] }
  0x1c   : > { %3026 = vmatpush3.bf16.msra.mxu0 %v3183_v3  ;;  %v1104_v46 = vmul.bf16 %v1072_v44, %v1040_v42  ;;  %v1106_v47 = vmul.bf16 %v1074_v45, %v1042_v43  ;;  %v1073_v52 = vld [vmem:[%s5039_s7 + $0xe8] sm:$0xff]  ;;  %v1075_v53 = vld [vmem:[%s5039_s7 + $0xf8] sm:$0xff]  ;;  %v1036_v58 = vld [vmem:[%s5038_s6 + $0xc0] sm:$0xff] }
  0x1d   : > { %3027 = vmatprep.subr.bf16.mxu0 %v3184_v7  ;;  %v1105_v56 = vmul.bf16 %v1073_v52, %v1041_v50  ;;  %v1107_v57 = vmul.bf16 %v1075_v53, %v1043_v51  ;;  %v1038_v59 = vld [vmem:[%s5038_s6 + $0xd0] sm:$0xff]  ;;  %v1068_v60 = vld [vmem:[%s5039_s7 + $0xc0] sm:$0xff]  ;;  %v1039_v50 = vld [vmem:[%s5038_s6 + $0xd8] sm:$0xff] }
  0x1e   : > { %3058 = vmatpush3.bf16.msra.mxu1 %v3191_v13  ;;  %v1136_v54 = vadd.bf16 %v1104_v46, %v1008_v40  ;;  %v1138_v55 = vadd.bf16 %v1106_v47, %v1010_v41  ;;  %v1070_v61 = vld [vmem:[%s5039_s7 + $0xd0] sm:$0xff]  ;;  %v1004_v2 = vld [vmem:[%s5037_s5 + $0xc0] sm:$0xff]  ;;  %v1100_v4 = vmul.bf16 %v1068_v60, %v1036_v58  ;;  %v1069_v51 = vld [vmem:[%s5039_s7 + $0xc8] sm:$0xff] }
  0x1f   : > { %3059 = vmatprep.subr.bf16.mxu1 %v3192_v15  ;;  %v3494_v0 = vadd.bf16 %v1105_v56, %v1009_v48  ;;  %v3496_v1 = vadd.bf16 %v1107_v57, %v1011_v49  ;;  %v1006_v3 = vld [vmem:[%s5037_s5 + $0xd0] sm:$0xff]  ;;  %v1102_v5 = vmul.bf16 %v1070_v61, %v1038_v59  ;;  %v1000_v8 = vld [vmem:[%s5037_s5 + $0xa0] sm:$0xff]  ;;  %v1037_v49 = vld [vmem:[%s5038_s6 + $0xc8] sm:$0xff] }
  0x20   : > { %3028 = vmatpush3.bf16.msra.mxu0 %v3184_v7  ;;  %v2790_v62 = vcombine.high %v1136_v54, %v1138_v55  ;;  %v2789_v63 = vcombine.low %v1136_v54, %v1138_v55  ;;  %v1002_v9 = vld [vmem:[%s5037_s5 + $0xb0] sm:$0xff]  ;;  %v1132_v11 = vadd.bf16 %v1100_v4, %v1004_v2  ;;  %v996_v22 = vld [vmem:[%s5037_s5 + $0x80] sm:$0xff]  ;;  %v1071_v52 = vld [vmem:[%s5039_s7 + $0xd8] sm:$0xff]  ;;  %v1101_v57 = vmul.bf16 %v1069_v51, %v1037_v49 }
  0x21   : > { %3029 = vmatprep.subr.bf16.mxu0 %v3185_v10  ;;  %v2792_v6 = vcombine.high %v3494_v0, %v3496_v1  ;;  %v2791_v7 = vcombine.low %v3494_v0, %v3496_v1  ;;  %v1034_v13 = vld [vmem:[%s5038_s6 + $0xb0] sm:$0xff]  ;;  %v1028_v24 = vld [vmem:[%s5038_s6 + $0x80] sm:$0xff]  ;;  %v1033_v55 = vld [vmem:[%s5038_s6 + $0xa8] sm:$0xff]  ;;  %v1103_v58 = vmul.bf16 %v1071_v52, %v1039_v50 }
  0x22   : > { %3060 = vmatpush3.bf16.msra.mxu1 %v3192_v15  ;;  %v1066_v15 = vld [vmem:[%s5039_s7 + $0xb0] sm:$0xff]  ;;  %v1024_v34 = vld [vmem:[%s5038_s6 + $0x60] sm:$0xff]  ;;  %v1035_v59 = vld [vmem:[%s5038_s6 + $0xb8] sm:$0xff] }
  0x23   : > { %3061 = vmatprep.subr.bf16.mxu1 %v3193_v37  ;;  %v1098_v17 = vmul.bf16 %v1066_v15, %v1034_v13  ;;  %v998_v23 = vld [vmem:[%s5037_s5 + $0x90] sm:$0xff]  ;;  %v992_v40 = vld [vmem:[%s5037_s5 + $0x60] sm:$0xff]  ;;  %v1065_v60 = vld [vmem:[%s5039_s7 + $0xa8] sm:$0xff] }
  0x24   : > { %3030 = vmatpush3.bf16.msra.mxu0 %v3185_v10  ;;  %v1032_v10 = vld [vmem:[%s5038_s6 + $0xa0] sm:$0xff]  ;;  %v1030_v25 = vld [vmem:[%s5038_s6 + $0x90] sm:$0xff]  ;;  %v1067_v61 = vld [vmem:[%s5039_s7 + $0xb8] sm:$0xff] }
  0x25   : > { %3031 = vmatprep.subr.bf16.mxu0 %v3186_v12  ;;  %v1026_v35 = vld [vmem:[%s5038_s6 + $0x70] sm:$0xff]  ;;  %v3577_v54 = vld [vmem:[%s5058_s20] ss:$0 sm:$0xff]  ;;  %v1005_v2 = vld [vmem:[%s5037_s5 + $0xc8] sm:$0xff] }
  0x26   : > { %3062 = vmatpush3.bf16.msra.mxu1 %v3193_v37  ;;  %v1058_v37 = vld [vmem:[%s5039_s7 + $0x70] sm:$0xff]  ;;  %v1003_v15 = vld [vmem:[%s5037_s5 + $0xb8] sm:$0xff] }
  0x27   : > { %3063 = vmatprep.subr.bf16.mxu1 %v3194_v38  ;;  %v994_v41 = vld [vmem:[%s5037_s5 + $0x70] sm:$0xff]  ;;  %v1090_v43 = vmul.bf16 %v1058_v37, %v1026_v35 }
  0x28   : > { %3032 = vmatpush3.bf16.msra.mxu0 %v3186_v12  ;;  %v1134_v12 = vadd.bf16 %v1102_v5, %v1006_v3  ;;  %v1007_v3 = vld [vmem:[%s5037_s5 + $0xd8] sm:$0xff] }
  0x29   : > { %3033 = vmatprep.subr.bf16.mxu0 %v3187_v14  ;;  %v1122_v45 = vadd.bf16 %v1090_v43, %v994_v41  ;;  %v1135_v13 = vadd.bf16 %v1103_v58, %v1007_v3 }
  0x2a   : > { %3064 = vmatpush3.bf16.msra.mxu1 %v3194_v38  ;;  %v2786_v18 = vcombine.high %v1132_v11, %v1134_v12  ;;  %v2785_v19 = vcombine.low %v1132_v11, %v1134_v12  ;;  %v1133_v12 = vadd.bf16 %v1101_v57, %v1005_v2 }
  0x2b   : > { %3065 = vmatprep.subr.bf16.mxu1 %v3195_v39 }
  0x2c   : > { %3034 = vmatpush3.bf16.msra.mxu0 %v3187_v14  ;;  %v1064_v14 = vld [vmem:[%s5039_s7 + $0xa0] sm:$0xff]  ;;  %v2787_v43 = vcombine.low %v1133_v12, %v1135_v13 }
  0x2d   : > { %1659 = vmatprep.subr.bf16.mxu0 %v2790_v62  ;;  %v1096_v16 = vmul.bf16 %v1064_v14, %v1032_v10  ;;  %v1001_v14 = vld [vmem:[%s5037_s5 + $0xa8] sm:$0xff] }
  0x2e   : > { %3066 = vmatpush3.bf16.msra.mxu1 %v3195_v39 }
  0x2f   : > { %3036 = vmatmul.mubr.bf16.vlgmr.msra.gmra.mxu0 %v614_v20  ;;  %1772 = vmatprep.subr.bf16.mxu1 %v2792_v6  ;;  %v1128_v20 = vadd.bf16 %v1096_v16, %v1000_v8  ;;  %v1097_v8 = vmul.bf16 %v1065_v60, %v1033_v55  ;;  %v1029_v16 = vld [vmem:[%s5038_s6 + $0x88] sm:$0xff] }
  0x30   : > { %3039 = vmatprep.mubr.bf16.mxu0 %v615_v21  ;;  %1660 = vmatpush1.bf16.msra.mxu0 %v2789_v63  ;;  %v1130_v21 = vadd.bf16 %v1098_v17, %v1002_v9  ;;  %v1099_v9 = vmul.bf16 %v1067_v61, %v1035_v59  ;;  %v993_v55 = vld [vmem:[%s5037_s5 + $0x68] sm:$0xff] }
  0x31   : > { %1661 = vmatprep.subr.bf16.mxu0 %v2786_v18 }
  0x32   : > { %v2782_v28 = vcombine.high %v1128_v20, %v1130_v21  ;;  %v2781_v29 = vcombine.low %v1128_v20, %v1130_v21  ;;  %v1061_v20 = vld [vmem:[%s5039_s7 + $0x88] sm:$0xff]  ;;  %v1063_v21 = vld [vmem:[%s5039_s7 + $0x98] sm:$0xff] }
  0x34   : > { %1662 = vmatpush1.bf16.msra.mxu0 %v2785_v19  ;;  %v1031_v19 = vld [vmem:[%s5038_s6 + $0x98] sm:$0xff] }
  0x35   : > { %1663 = vmatprep.subr.bf16.mxu0 %v2782_v28  ;;  %v1131_v28 = vadd.bf16 %v1099_v9, %v1003_v15  ;;  %v1095_v35 = vmul.bf16 %v1063_v21, %v1031_v19 }
  0x37   : > { %3040 = vmatmul.mubr.bf16.gmra.mxu0 %v616_v26  ;;  %v1060_v26 = vld [vmem:[%s5039_s7 + $0x80] sm:$0xff] }
  0x38   : > { %3043 = vmatprep.mubr.bf16.mxu0 %v617_v27  ;;  %v1062_v27 = vld [vmem:[%s5039_s7 + $0x90] sm:$0xff]  ;;  %v1092_v30 = vmul.bf16 %v1060_v26, %v1028_v24  ;;  %1664 = vmatpush1.bf16.msra.mxu0 %v2781_v29 }
  0x39   : > { %v1094_v31 = vmul.bf16 %v1062_v27, %v1030_v25  ;;  %v1129_v27 = vadd.bf16 %v1097_v8, %v1001_v14 }
  0x3b   : > { %v2783_v59 = vcombine.low %v1129_v27, %v1131_v28 }
  0x3f   : > { %3044 = vmatmul.mubr.bf16.gmra.mxu0 %v618_v32  ;;  %v1124_v32 = vadd.bf16 %v1092_v30, %v996_v22 }
  0x40   : > { %3047 = vmatprep.mubr.bf16.mxu0 %v619_v33  ;;  %v1126_v33 = vadd.bf16 %v1094_v31, %v998_v23  ;;  %v2788_v31 = vcombine.high %v1133_v12, %v1135_v13 }
  0x42   : > { %v2778_v38 = vcombine.high %v1124_v32, %v1126_v33  ;;  %v2777_v39 = vcombine.low %v1124_v32, %v1126_v33  ;;  %v997_v32 = vld [vmem:[%s5037_s5 + $0x88] sm:$0xff]  ;;  %v999_v33 = vld [vmem:[%s5037_s5 + $0x98] sm:$0xff] }
  0x43   : > { %v1127_v50 = vadd.bf16 %v1095_v35, %v999_v33  ;;  %v1021_v33 = vld [vmem:[%s5038_s6 + $0x48] sm:$0xff]  ;;  %v988_v35 = vld [vmem:[%s5037_s5 + $0x40] sm:$0xff] }
  0x44   : > { %1665 = vmatprep.subr.bf16.mxu0 %v2778_v38  ;;  %v1027_v38 = vld [vmem:[%s5038_s6 + $0x78] sm:$0xff] }
  0x45   : > { %1666 = vmatpush1.bf16.msra.mxu0 %v2777_v39  ;;  %v1057_v39 = vld [vmem:[%s5039_s7 + $0x68] sm:$0xff] }
  0x47   : > { %3048 = vmatmul.mubr.bf16.gmra.mxu0 %v620_v36  ;;  %v1056_v36 = vld [vmem:[%s5039_s7 + $0x60] sm:$0xff] }
  0x48   : > { %v1088_v42 = vmul.bf16 %v1056_v36, %v1024_v34  ;;  %v1093_v34 = vmul.bf16 %v1061_v20, %v1029_v16  ;;  %v1025_v36 = vld [vmem:[%s5038_s6 + $0x68] sm:$0xff] }
  0x49   : > { %v1089_v51 = vmul.bf16 %v1057_v39, %v1025_v36  ;;  %v990_v36 = vld [vmem:[%s5037_s5 + $0x50] sm:$0xff] }
  0x4a   : > { %v1120_v44 = vadd.bf16 %v1088_v42, %v992_v40  ;;  %v1059_v40 = vld [vmem:[%s5039_s7 + $0x78] sm:$0xff]  ;;  %v1125_v49 = vadd.bf16 %v1093_v34, %v997_v32 }
  0x4b   : > { %v1091_v52 = vmul.bf16 %v1059_v40, %v1027_v38  ;;  %v1023_v34 = vld [vmem:[%s5038_s6 + $0x58] sm:$0xff]  ;;  %v989_v38 = vld [vmem:[%s5037_s5 + $0x48] sm:$0xff] }
  0x4c   : > { %v2774_v46 = vcombine.high %v1120_v44, %v1122_v45  ;;  %v2773_v47 = vcombine.low %v1120_v44, %v1122_v45  ;;  %v2780_v61 = vcombine.high %v1125_v49, %v1127_v50  ;;  %v2779_v9 = vcombine.low %v1125_v49, %v1127_v50  ;;  %v991_v40 = vld [vmem:[%s5037_s5 + $0x58] sm:$0xff]  ;;  %v1050_v49 = vld [vmem:[%s5039_s7 + $0x30] sm:$0xff] }
  0x4e   : > { %1667 = vmatprep.subr.bf16.mxu0 %v2774_v46 }
  0x4f   : > { %1668 = vmatpush1.bf16.msra.mxu0 %v2773_v47  ;;  %v2784_v47 = vcombine.high %v1129_v27, %v1131_v28 }
  0xef   : > { %v3037_v48 = vpop.f32.mrf.mxu0 }
  0xf0   : > { %v718_v4 = vadd.f32 %v3037_v48, %v3577_v54 }
  0xf1   : > { %v709_v53 = vpop.f32.mrf.mxu0 }
  0xf2   : > { %v710_v62 = vadd.f32 %v3577_v54, %v709_v53  ;;  %v774_v22 = vmax.f32 %v718_v4, 0.0 }
  0xf3   : > { %v3038_v56 = vpop.f32.mrf.mxu0 }
  0xf4   : > { %v721_v63 = vadd.f32 %v3038_v56, %v3577_v54  ;;  %v772_v17 = vmax.f32 %v710_v62, 0.0  ;;  %v995_v56 = vld [vmem:[%s5037_s5 + $0x78] sm:$0xff]  ;;  %v1121_v62 = vadd.bf16 %v1089_v51, %v993_v55  ;;  %v1017_v51 = vld [vmem:[%s5038_s6 + $0x28] sm:$0xff] }
  0xf5   : > { %v712_v5 = vpop.f32.mrf.mxu0 }
  0xf6   : > { %v713_v6 = vadd.f32 %v3577_v54, %v712_v5  ;;  %v775_v10 = vmax.f32 %v721_v63, 0.0  ;;  %v1123_v63 = vadd.bf16 %v1091_v52, %v995_v56 }
  0xf7   : > { %v3041_v11 = vpop.f32.mrf.mxu0 }
  0xf8   : > { %v773_v18 = vmax.f32 %v713_v6, 0.0  ;;  %v734_v23 = vadd.f32 %v3041_v11, %v3577_v54  ;;  %v806_v29 = vpack.c.bf16 %v775_v10, %v774_v22  ;;  %v2776_v11 = vcombine.high %v1121_v62, %v1123_v63 }
  0xf9   : > { %v725_v24 = vpop.f32.mrf.mxu0 }
  0xfa   : > { %v726_v25 = vadd.f32 %v3577_v54, %v725_v24  ;;  %v805_v26 = vpack.c.bf16 %v773_v18, %v772_v17  ;;  %v778_v41 = vmax.f32 %v734_v23, 0.0  ;;  %v2775_v18 = vcombine.low %v1121_v62, %v1123_v63 }
  0xfb   : > { %v3042_v30 = vpop.f32.mrf.mxu0 }
  0xfc   : > { %v737_v37 = vadd.f32 %v3042_v30, %v3577_v54  ;;  %3067 = vmatprep.mubr.bf16.mxu1 %v805_v26  ;;  %v776_v44 = vmax.f32 %v726_v25, 0.0  ;;  %v1022_v30 = vld [vmem:[%s5038_s6 + $0x50] sm:$0xff] }
  0xfd   : > { %v728_v42 = vpop.f32.mrf.mxu0  ;;  %3068 = vmatmul.mubr.bf16.vlgmr.msra.gmra.mxu1 %v806_v29  ;;  %v1020_v29 = vld [vmem:[%s5038_s6 + $0x40] sm:$0xff] }
  0xfe   : > { %v779_v45 = vmax.f32 %v737_v37, 0.0  ;;  %v729_v46 = vadd.f32 %v3577_v54, %v728_v42  ;;  %1773 = vmatpush1.bf16.msra.mxu1 %v2791_v7  ;;  %v1055_v42 = vld [vmem:[%s5039_s7 + $0x58] sm:$0xff] }
  0xff   : > { %v3045_v48 = vpop.f32.mrf.mxu0  ;;  %1774 = vmatprep.subr.bf16.mxu1 %v2788_v31  ;;  %v1052_v31 = vld [vmem:[%s5039_s7 + $0x40] sm:$0xff] }
 0x100   : > { %v777_v53 = vmax.f32 %v729_v46, 0.0  ;;  %v808_v57 = vpack.c.bf16 %v779_v45, %v778_v41  ;;  %v750_v0 = vadd.f32 %v3045_v48, %v3577_v54  ;;  %v1084_v32 = vmul.bf16 %v1052_v31, %v1020_v29  ;;  %v1053_v41 = vld [vmem:[%s5039_s7 + $0x48] sm:$0xff]  ;;  %v1016_v46 = vld [vmem:[%s5038_s6 + $0x20] sm:$0xff] }
 0x101   : > { %v741_v1 = vpop.f32.mrf.mxu0  ;;  %v1087_v45 = vmul.bf16 %v1055_v42, %v1023_v34  ;;  %v1048_v48 = vld [vmem:[%s5039_s7 + $0x20] sm:$0xff]  ;;  %v1304_v42 = vld [vmem:[%s5045_s13 + $0x7c] sm:$0xf] }
 0x102   : > { %v807_v7 = vpack.c.bf16 %v777_v53, %v776_v44  ;;  %v742_v58 = vadd.f32 %v3577_v54, %v741_v1  ;;  %1775 = vmatpush1.bf16.msra.mxu1 %v2787_v43  ;;  %v782_v3 = vmax.f32 %v750_v0, 0.0  ;;  %v1116_v39 = vadd.bf16 %v1084_v32, %v988_v35  ;;  %v986_v0 = vld [vmem:[%s5037_s5 + $0x30] sm:$0xff]  ;;  %v1019_v1 = vld [vmem:[%s5038_s6 + $0x38] sm:$0xff] }
 0x103   : > { %v3046_v60 = vpop.f32.mrf.mxu0  ;;  %1776 = vmatprep.subr.bf16.mxu1 %v2784_v47  ;;  %v1085_v44 = vmul.bf16 %v1053_v41, %v1021_v33  ;;  %v1018_v47 = vld [vmem:[%s5038_s6 + $0x30] sm:$0xff]  ;;  %v1080_v50 = vmul.bf16 %v1048_v48, %v1016_v46  ;;  %v1119_v56 = vadd.bf16 %v1087_v45, %v991_v40  ;;  %v1240_v40 = vld [vmem:[%s5044_s12 + $0x7c] sm:$0xf]  ;;  %v1303_v41 = vld [vmem:[%s5045_s13 + $0x78] sm:$0xf] }
 0x104   : > { %3071 = vmatprep.mubr.bf16.mxu1 %v807_v7  ;;  %v753_v2 = vadd.f32 %v3046_v60, %v3577_v54  ;;  %v780_v5 = vmax.f32 %v742_v58, 0.0  ;;  %v1082_v7 = vmul.bf16 %v1050_v49, %v1018_v47  ;;  %v987_v60 = vld [vmem:[%s5037_s5 + $0x38] sm:$0xff] }
 0x105   : > { %3072 = vmatmul.mubr.bf16.gmra.mxu1 %v808_v57  ;;  %v744_v4 = vpop.f32.mrf.mxu0  ;;  %v1117_v55 = vadd.bf16 %v1085_v44, %v989_v38  ;;  %v984_v57 = vld [vmem:[%s5037_s5 + $0x20] sm:$0xff]  ;;  %v1176_v38 = vld [vmem:[%s5043_s11 + $0x7c] sm:$0xf]  ;;  %v1368_v44 = vmul.bf16 %v1304_v42, %v1240_v40  ;;  %v1207_v47 = vld [vmem:[%s5043_s11 + $0xf8] sm:$0xf] }
 0x106   : > { %v783_v6 = vmax.f32 %v753_v2, 0.0  ;;  %v745_v8 = vadd.f32 %v3577_v54, %v744_v4  ;;  %1777 = vmatpush1.bf16.msra.mxu1 %v2783_v59  ;;  %v1112_v58 = vadd.bf16 %v1080_v50, %v984_v57  ;;  %v985_v59 = vld [vmem:[%s5037_s5 + $0x28] sm:$0xff]  ;;  %v1051_v2 = vld [vmem:[%s5039_s7 + $0x38] sm:$0xff]  ;;  %v1012_v4 = vld [vmem:[%s5038_s6] sm:$0xff] }
 0x107   : > { %v3049_v10 = vpop.f32.mrf.mxu0  ;;  %1778 = vmatprep.subr.bf16.mxu1 %v2780_v61  ;;  %v1049_v61 = vld [vmem:[%s5039_s7 + $0x28] sm:$0xff]  ;;  %v2772_v62 = vcombine.high %v1117_v55, %v1119_v56  ;;  %v2771_v63 = vcombine.low %v1117_v55, %v1119_v56  ;;  %v1432_v46 = vadd.bf16 %v1368_v44, %v1176_v38  ;;  %v1271_v48 = vld [vmem:[%s5044_s12 + $0xf8] sm:$0xf]  ;;  %v1272_v49 = vld [vmem:[%s5044_s12 + $0xfc] sm:$0xf] }
 0x108   : > { %v781_v12 = vmax.f32 %v745_v8, 0.0  ;;  %v810_v13 = vpack.c.bf16 %v783_v6, %v782_v3  ;;  %v766_v14 = vadd.f32 %v3049_v10, %v3577_v54  ;;  %v1081_v3 = vmul.bf16 %v1049_v61, %v1017_v51  ;;  %v1046_v10 = vld [vmem:[%s5039_s7 + $0x10] sm:$0xff]  ;;  %v1335_v50 = vld [vmem:[%s5045_s13 + $0xf8] sm:$0xf]  ;;  %v1336_v51 = vld [vmem:[%s5045_s13 + $0xfc] sm:$0xf] }
 0x109   : > { %v757_v15 = vpop.f32.mrf.mxu0  ;;  %v1114_v6 = vadd.bf16 %v1082_v7, %v986_v0  ;;  %v1083_v8 = vmul.bf16 %v1051_v2, %v1019_v1  ;;  %v1399_v55 = vmul.bf16 %v1335_v50, %v1271_v48  ;;  %v1400_v56 = vmul.bf16 %v1336_v51, %v1272_v49  ;;  %v1223_v7 = vld [vmem:[%s5044_s12 + $0x38] sm:$0xf]  ;;  %v3834_v2 = vld [vmem:[%s5045_s13 + $0xbc] sm:$0xf]  ;;  %v1158_v38 = vld [vmem:[%s5043_s11 + $0x34] sm:$0xf] }
 0x10a   : > { %v809_v16 = vpack.c.bf16 %v781_v12, %v780_v5  ;;  %v758_v17 = vadd.f32 %v3577_v54, %v757_v15  ;;  %1779 = vmatpush1.bf16.msra.mxu1 %v2779_v9  ;;  %v786_v21 = vmax.f32 %v766_v14, 0.0  ;;  %v1014_v5 = vld [vmem:[%s5038_s6 + $0x10] sm:$0xff]  ;;  %v1044_v9 = vld [vmem:[%s5039_s7] sm:$0xff]  ;;  %v1113_v12 = vadd.bf16 %v1081_v3, %v985_v59  ;;  %v1287_v59 = vld [vmem:[%s5045_s13 + $0x38] sm:$0xf] }
 0x10b   : > { %v3050_v19 = vpop.f32.mrf.mxu0  ;;  %1780 = vmatprep.subr.bf16.mxu1 %v2776_v11  ;;  %v1013_v11 = vld [vmem:[%s5038_s6 + $0x8] sm:$0xff]  ;;  %v982_v14 = vld [vmem:[%s5037_s5 + $0x10] sm:$0xff]  ;;  %v1076_v15 = vmul.bf16 %v1044_v9, %v1012_v4  ;;  %v1463_v57 = vadd.bf16 %v1399_v55, %v1207_v47  ;;  %v3819_v61 = vld [vmem:[%s5044_s12 + $0xb8] sm:$0xf] }
 0x10c   : > { %3075 = vmatprep.mubr.bf16.mxu1 %v809_v16  ;;  %v769_v20 = vadd.f32 %v3050_v19, %v3577_v54  ;;  %v784_v23 = vmax.f32 %v758_v17, 0.0  ;;  %v1078_v16 = vmul.bf16 %v1046_v10, %v1014_v5  ;;  %v2766_v17 = vcombine.high %v1112_v58, %v1114_v6  ;;  %v3839_v3 = vld [vmem:[%s5044_s12 + $0x70] sm:$0xf]  ;;  %v3844_v4 = vld [vmem:[%s5044_s12 + $0x74] sm:$0xf] }
 0x10d   : > { %3076 = vmatmul.mubr.bf16.gmra.mxu1 %v810_v13  ;;  %v760_v22 = vpop.f32.mrf.mxu0  ;;  %v980_v13 = vld [vmem:[%s5037_s5] sm:$0xff]  ;;  %v1115_v19 = vadd.bf16 %v1083_v8, %v987_v60  ;;  %v1288_v60 = vld [vmem:[%s5045_s13 + $0x3c] sm:$0xf]  ;;  %v3849_v5 = vld [vmem:[%s5045_s13 + $0x70] sm:$0xf] }
 0x10e   : > { %v787_v24 = vmax.f32 %v769_v20, 0.0  ;;  %v761_v25 = vadd.f32 %v3577_v54, %v760_v22  ;;  %1781 = vmatpush1.bf16.msra.mxu1 %v2775_v18  ;;  %v1054_v54 = vld [vmem:[%s5039_s7 + $0x50] sm:$0xff]  ;;  %v2765_v18 = vcombine.low %v1112_v58, %v1114_v6  ;;  %v981_v20 = vld [vmem:[%s5037_s5 + $0x8] sm:$0xff]  ;;  %v1224_v58 = vld [vmem:[%s5044_s12 + $0x3c] sm:$0xf] }
 0x10f   : > { %v1086_v37 = vmul.bf16 %v1054_v54, %v1022_v30  ;;  %1782 = vmatprep.subr.bf16.mxu1 %v2772_v62  ;;  %v1045_v22 = vld [vmem:[%s5039_s7 + $0x8] sm:$0xff]  ;;  %v2767_v29 = vcombine.low %v1113_v12, %v1115_v19  ;;  %v3824_v62 = vld [vmem:[%s5044_s12 + $0xbc] sm:$0xf]  ;;  %v3854_v6 = vld [vmem:[%s5045_s13 + $0x74] sm:$0xf] }
 0x110   : > { %v785_v26 = vmax.f32 %v761_v25, 0.0  ;;  %v812_v27 = vpack.c.bf16 %v787_v24, %v786_v21  ;;  %v1015_v21 = vld [vmem:[%s5038_s6 + $0x18] sm:$0xff]  ;;  %v1110_v24 = vadd.bf16 %v1078_v16, %v982_v14  ;;  %v3865_v10 = vld [vmem:[%s5044_s12 + $0x30] sm:$0xf]  ;;  %v1351_v14 = vmul.bf16 %v1287_v59, %v1223_v7  ;;  %v1283_v40 = vld [vmem:[%s5045_s13 + $0x28] sm:$0xf] }
 0x111   : > { %v1118_v43 = vadd.bf16 %v1086_v37, %v990_v36  ;;  %v983_v25 = vld [vmem:[%s5037_s5 + $0x18] sm:$0xff]  ;;  %v3268_v36 = vmov 0   ;;  %v3881_v16 = vld [vmem:[%s5044_s12 + $0xf0] sm:$0xf]  ;;  %v1206_v47 = vld [vmem:[%s5043_s11 + $0xf4] sm:$0xf] }
 0x112   : > { %v811_v28 = vpack.c.bf16 %v785_v26, %v784_v23  ;;  %1783 = vmatpush1.bf16.msra.mxu1 %v2771_v63  ;;  %v1108_v23 = vadd.bf16 %v1076_v15, %v980_v13  ;;  %v1047_v26 = vld [vmem:[%s5039_s7 + $0x18] sm:$0xff]  ;;  %1691 = vmatprep.mubr.bf16.mxu0 %v3268_v36  ;;  %v1286_v13 = vld [vmem:[%s5045_s13 + $0x34] sm:$0xf]  ;;  %v1352_v15 = vmul.bf16 %v1288_v60, %v1224_v58  ;;  %v1189_v48 = vld [vmem:[%s5043_s11 + $0xb0] sm:$0xf] }
 0x113   : > { %v2770_v52 = vcombine.high %v1116_v39, %v1118_v43  ;;  %v2769_v53 = vcombine.low %v1116_v39, %v1118_v43  ;;  %v1079_v30 = vmul.bf16 %v1047_v26, %v1015_v21  ;;  %v1175_v37 = vld [vmem:[%s5043_s11 + $0x78] sm:$0xf]  ;;  %v1160_v9 = vld [vmem:[%s5043_s11 + $0x3c] sm:$0xf]  ;;  %v3906_v21 = vld [vmem:[%s5044_s12 + $0xb4] sm:$0xf] }
 0x114   : > { %3079 = vmatprep.mubr.bf16.mxu1 %v811_v28  ;;  %v2768_v28 = vcombine.high %v1113_v12, %v1115_v19  ;;  %v2762_v31 = vcombine.high %v1108_v23, %v1110_v24  ;;  %v2761_v54 = vcombine.low %v1108_v23, %v1110_v24  ;;  %v1239_v39 = vld [vmem:[%s5044_s12 + $0x78] sm:$0xf]  ;;  %v1285_v12 = vld [vmem:[%s5045_s13 + $0x30] sm:$0xf]  ;;  %v3896_v19 = vld [vmem:[%s5045_s13 + $0xf4] sm:$0xf] }
 0x115   : > { %3080 = vmatmul.mubr.bf16.gmra.mxu1 %v812_v27  ;;  %1669 = vmatprep.subr.bf16.mxu0 %v2770_v52  ;;  %v1077_v27 = vmul.bf16 %v1045_v22, %v1013_v11  ;;  %v1111_v33 = vadd.bf16 %v1079_v30, %v983_v25  ;;  %v1367_v43 = vmul.bf16 %v1303_v41, %v1239_v39  ;;  %v3829_v63 = vld [vmem:[%s5045_s13 + $0xb8] sm:$0xf]  ;;  %v3870_v11 = vld [vmem:[%s5044_s12 + $0x34] sm:$0xf]  ;;  %v1317_v22 = vld [vmem:[%s5045_s13 + $0xb0] sm:$0xf] }
 0x116   : > { %1670 = vmatpush1.bf16.msra.mxu0 %v2769_v53  ;;  %1784 = vmatprep.subr.bf16.mxu1 %v2768_v28  ;;  %v1208_v53 = vld [vmem:[%s5043_s11 + $0xfc] sm:$0xf]  ;;  %v1159_v8 = vld [vmem:[%s5043_s11 + $0x38] sm:$0xf]  ;;  %v1318_v23 = vld [vmem:[%s5045_s13 + $0xb4] sm:$0xf]  ;;  %v1349_v44 = vmul.bf16 %v1285_v12, %v3865_v10 }
 0x117   : > { %1671 = vmatprep.subr.bf16.mxu0 %v2766_v17  ;;  %v1109_v32 = vadd.bf16 %v1077_v27, %v981_v20  ;;  %1785 = vmatpush1.bf16.msra.mxu1 %v2767_v29  ;;  %v1431_v45 = vadd.bf16 %v1367_v43, %v1175_v37  ;;  %v1464_v0 = vadd.bf16 %v1400_v56, %v1208_v53  ;;  %v3886_v17 = vld [vmem:[%s5044_s12 + $0xf4] sm:$0xf]  ;;  %v3901_v20 = vld [vmem:[%s5044_s12 + $0xb0] sm:$0xf]  ;;  %v3917_v24 = vld [vmem:[%s5044_s12 + $0x68] sm:$0xf] }
 0x118   : > { %1804 = vmatprep.mubr.bf16.mxu1 %v3268_v36  ;;  %v3922_v25 = vld [vmem:[%s5044_s12 + $0x6c] sm:$0xf]  ;;  %v1191_v26 = vld [vmem:[%s5043_s11 + $0xb8] sm:$0xf]  ;;  %v1192_v27 = vld [vmem:[%s5043_s11 + $0xbc] sm:$0xf]  ;;  %v3968_v42 = vadd.bf16 %v1351_v14, %v1159_v8  ;;  %v3970_v43 = vadd.bf16 %v1352_v15, %v1160_v9  ;;  %v1381_v53 = vmul.bf16 %v1317_v22, %v3901_v20  ;;  %v1382_v55 = vmul.bf16 %v1318_v23, %v3906_v21 }
 0x119   : > { %v2764_v34 = vcombine.high %v1109_v32, %v1111_v33  ;;  %v2763_v35 = vcombine.low %v1109_v32, %v1111_v33  ;;  %v2808_v52 = vcombine.low %v1431_v45, %v1432_v46  ;;  %v2824_v1 = vcombine.low %v1463_v57, %v1464_v0  ;;  %v1173_v28 = vld [vmem:[%s5043_s11 + $0x70] sm:$0xf]  ;;  %v1174_v29 = vld [vmem:[%s5043_s11 + $0x74] sm:$0xf]  ;;  %v1299_v30 = vld [vmem:[%s5045_s13 + $0x68] sm:$0xf] }
 0x11a   : > { %1672 = vmatpush1.bf16.msra.mxu0 %v2765_v18  ;;  %v3891_v18 = vld [vmem:[%s5045_s13 + $0xf0] sm:$0xf]  ;;  %v1383_v32 = vmul.bf16 %v3829_v63, %v3819_v61  ;;  %v1384_v33 = vmul.bf16 %v3834_v2, %v3824_v62  ;;  %v1220_v39 = vld [vmem:[%s5044_s12 + $0x2c] sm:$0xf]  ;;  %v1350_v45 = vmul.bf16 %v1286_v13, %v3870_v11  ;;  %v1190_v49 = vld [vmem:[%s5043_s11 + $0xb4] sm:$0xf]  ;;  %v1363_v58 = vmul.bf16 %v1299_v30, %v3917_v24 }
 0x11b   : > { %1673 = vmatprep.subr.bf16.mxu0 %v2762_v31  ;;  %1786 = vmatprep.subr.bf16.mxu1 %v2764_v34  ;;  %v1300_v31 = vld [vmem:[%s5045_s13 + $0x6c] sm:$0xf]  ;;  %v1365_v34 = vmul.bf16 %v3849_v5, %v3839_v3  ;;  %v1157_v37 = vld [vmem:[%s5043_s11 + $0x30] sm:$0xf]  ;;  %v1267_v50 = vld [vmem:[%s5044_s12 + $0xe8] sm:$0xf]  ;;  %v1397_v51 = vmul.bf16 %v3891_v18, %v3881_v16  ;;  %v4054_v20 = vadd.bf16 %v1382_v55, %v1190_v49 }
 0x11c   : > { %1787 = vmatpush1.bf16.msra.mxu1 %v2763_v35  ;;  %v1366_v35 = vmul.bf16 %v3854_v6, %v3844_v4  ;;  %v1284_v41 = vld [vmem:[%s5045_s13 + $0x2c] sm:$0xf]  ;;  %v1205_v46 = vld [vmem:[%s5043_s11 + $0xf0] sm:$0xf]  ;;  %v1171_v56 = vld [vmem:[%s5043_s11 + $0x68] sm:$0xf]  ;;  %v1364_v59 = vmul.bf16 %v1300_v31, %v3922_v25  ;;  %v4018_v2 = vadd.bf16 %v1383_v32, %v1191_v26  ;;  %v4020_v3 = vadd.bf16 %v1384_v33, %v1192_v27 }
 0x11d   : > { %2923 = vmatprep.subr.bf16.mxu1 %v2824_v1  ;;  %v1268_v57 = vld [vmem:[%s5044_s12 + $0xec] sm:$0xf]  ;;  %v1331_v0 = vld [vmem:[%s5045_s13 + $0xe8] sm:$0xf]  ;;  %v1348_v63 = vmul.bf16 %v1284_v41, %v1220_v39  ;;  %v4022_v4 = vadd.bf16 %v1365_v34, %v1173_v28  ;;  %v4035_v10 = vadd.bf16 %v1349_v44, %v1157_v37  ;;  %v4037_v11 = vadd.bf16 %v1350_v45, %v1158_v38  ;;  %v4059_v21 = vld [vmem:[%s5044_s12 + $0x60] sm:$0xf] }
 0x11e   : > { %1674 = vmatpush1.bf16.msra.mxu0 %v2761_v54  ;;  %v1219_v54 = vld [vmem:[%s5044_s12 + $0x28] sm:$0xf]  ;;  %v1332_v1 = vld [vmem:[%s5045_s13 + $0xec] sm:$0xf]  ;;  %v4024_v5 = vadd.bf16 %v1366_v35, %v1174_v29  ;;  %v1395_v12 = vmul.bf16 %v1331_v0, %v1267_v50  ;;  %v4064_v22 = vld [vmem:[%s5044_s12 + $0x64] sm:$0xf]  ;;  %v4071_v25 = vadd.bf16 %v1363_v58, %v1171_v56  ;;  %v2800_v44 = vcombine.low %v3968_v42, %v3970_v43 }
 0x11f   : > { %2859 = vmatprep.subr.bf16.mxu0 %v2808_v52  ;;  %v1398_v52 = vmul.bf16 %v3896_v19, %v3886_v17  ;;  %v1172_v7 = vld [vmem:[%s5043_s11 + $0x6c] sm:$0xf]  ;;  %v1155_v60 = vld [vmem:[%s5043_s11 + $0x28] sm:$0xf]  ;;  %v1347_v62 = vmul.bf16 %v1283_v40, %v1219_v54  ;;  %v1396_v13 = vmul.bf16 %v1332_v1, %v1268_v57  ;;  %v4048_v17 = vadd.bf16 %v1397_v51, %v1205_v46  ;;  %v1297_v23 = vld [vmem:[%s5045_s13 + $0x60] sm:$0xf] }
 0x120   : > { %v1156_v61 = vld [vmem:[%s5043_s11 + $0x2c] sm:$0xf]  ;;  %v1203_v6 = vld [vmem:[%s5043_s11 + $0xe8] sm:$0xf]  ;;  %v4052_v19 = vadd.bf16 %v1381_v53, %v1189_v48  ;;  %v4073_v26 = vadd.bf16 %v1364_v59, %v1172_v7  ;;  %v1298_v31 = vld [vmem:[%s5045_s13 + $0x64] sm:$0xf]  ;;  %v2816_v45 = vcombine.low %v4018_v2, %v4020_v3  ;;  %v1361_v57 = vmul.bf16 %v1297_v23, %v4059_v21 }
 0x121   : > { %v1204_v8 = vld [vmem:[%s5043_s11 + $0xec] sm:$0xf]  ;;  %v1251_v9 = vld [vmem:[%s5044_s12 + $0xa8] sm:$0xf]  ;;  %v4050_v18 = vadd.bf16 %v1398_v52, %v1206_v47  ;;  %v4075_v27 = vadd.bf16 %v1347_v62, %v1155_v60  ;;  %v4077_v28 = vadd.bf16 %v1348_v63, %v1156_v61  ;;  %v4091_v54 = vld [vmem:[%s5044_s12 + $0x20] sm:$0xf]  ;;  %v4127_v46 = vadd.bf16 %v1395_v12, %v1203_v6 }
 0x122   : > { %v1252_v14 = vld [vmem:[%s5044_s12 + $0xac] sm:$0xf]  ;;  %v1315_v15 = vld [vmem:[%s5045_s13 + $0xa8] sm:$0xf]  ;;  %v4096_v32 = vld [vmem:[%s5045_s13 + $0x20] sm:$0xf]  ;;  %v4129_v47 = vadd.bf16 %v1396_v13, %v1204_v8  ;;  %v1362_v62 = vmul.bf16 %v1298_v31, %v4064_v22  ;;  %v5059_v3 = vcombine.low %v4022_v4, %v4024_v5 }
 0x123   : > { %v1316_v16 = vld [vmem:[%s5045_s13 + $0xac] sm:$0xf]  ;;  %v1187_v29 = vld [vmem:[%s5043_s11 + $0xa8] sm:$0xf]  ;;  %v1379_v33 = vmul.bf16 %v1315_v15, %v1251_v9  ;;  %v4101_v35 = vld [vmem:[%s5044_s12 + $0x24] sm:$0xf] }
 0x124   : > { %v1188_v30 = vld [vmem:[%s5043_s11 + $0xac] sm:$0xf]  ;;  %v1380_v34 = vmul.bf16 %v1316_v16, %v1252_v14  ;;  %v4106_v37 = vld [vmem:[%s5045_s13 + $0x24] sm:$0xf]  ;;  %v4111_v38 = vld [vmem:[%s5044_s12 + $0xe0] sm:$0xf]  ;;  %v1345_v16 = vmul.bf16 %v4096_v32, %v4091_v54 }
 0x125   : > { %v4116_v39 = vld [vmem:[%s5044_s12 + $0xe4] sm:$0xf]  ;;  %v4121_v40 = vld [vmem:[%s5036_s4] ss:$0 sm:$0xff]  ;;  %v1231_v6 = vld [vmem:[%s5044_s12 + $0x58] sm:$0xf]  ;;  %v4184_v13 = vadd.bf16 %v1379_v33, %v1187_v29  ;;  %v1346_v31 = vmul.bf16 %v4106_v37, %v4101_v35 }
 0x126   : > { %v1169_v48 = vld [vmem:[%s5043_s11 + $0x60] sm:$0xf]  ;;  %v1330_v50 = vld [vmem:[%s5045_s13 + $0xe4] sm:$0xf]  ;;  %v1232_v8 = vld [vmem:[%s5044_s12 + $0x5c] sm:$0xf]  ;;  %v4186_v14 = vadd.bf16 %v1380_v34, %v1188_v30 }
 0x127   : > { %v1329_v49 = vld [vmem:[%s5045_s13 + $0xe0] sm:$0xf]  ;;  %v1170_v56 = vld [vmem:[%s5043_s11 + $0x64] sm:$0xf]  ;;  %v1295_v9 = vld [vmem:[%s5045_s13 + $0x58] sm:$0xf]  ;;  %v1394_v34 = vmul.bf16 %v1330_v50, %v4116_v39  ;;  %v4218_v30 = vadd.bf16 %v1361_v57, %v1169_v48 }
 0x128   : > { %v4143_v51 = vld [vmem:[%s5044_s12 + $0xa0] sm:$0xf]  ;;  %v1250_v0 = vld [vmem:[%s5044_s12 + $0xa4] sm:$0xf]  ;;  %v1296_v21 = vld [vmem:[%s5045_s13 + $0x5c] sm:$0xf]  ;;  %v1393_v33 = vmul.bf16 %v1329_v49, %v4111_v38  ;;  %v4232_v50 = vadd.bf16 %v1362_v62, %v1170_v56  ;;  %v1359_v57 = vmul.bf16 %v1295_v9, %v1231_v6 }
 0x129   : > { %v1313_v1 = vld [vmem:[%s5045_s13 + $0xa0] sm:$0xf]  ;;  %v1314_v7 = vld [vmem:[%s5045_s13 + $0xa4] sm:$0xf]  ;;  %v1215_v22 = vld [vmem:[%s5044_s12 + $0x18] sm:$0xf] }
 0x12a   : > { %v1153_v63 = vld [vmem:[%s5043_s11 + $0x20] sm:$0xf]  ;;  %v1154_v15 = vld [vmem:[%s5043_s11 + $0x24] sm:$0xf]  ;;  %v1279_v23 = vld [vmem:[%s5045_s13 + $0x18] sm:$0xf]  ;;  %v1377_v37 = vmul.bf16 %v1313_v1, %v4143_v51  ;;  %v1378_v60 = vmul.bf16 %v1314_v7, %v1250_v0  ;;  %v1360_v0 = vmul.bf16 %v1296_v21, %v1232_v8 }
 0x12b   : > { %v1201_v54 = vld [vmem:[%s5043_s11 + $0xe0] sm:$0xf]  ;;  %v1202_v32 = vld [vmem:[%s5043_s11 + $0xe4] sm:$0xf]  ;;  %v1216_v38 = vld [vmem:[%s5044_s12 + $0x1c] sm:$0xf]  ;;  %v1343_v7 = vmul.bf16 %v1279_v23, %v1215_v22  ;;  %v4245_v62 = vadd.bf16 %v1345_v16, %v1153_v63  ;;  %v4262_v9 = vadd.bf16 %v1346_v31, %v1154_v15 }
 0x12c   : > { %v1186_v35 = vld [vmem:[%s5043_s11 + $0xa4] sm:$0xf]  ;;  %v1280_v39 = vld [vmem:[%s5045_s13 + $0x1c] sm:$0xf]  ;;  %v1167_v48 = vld [vmem:[%s5043_s11 + $0x58] sm:$0xf]  ;;  %v4264_v63 = vadd.bf16 %v1393_v33, %v1201_v54 }
 0x12d   : > { %v1168_v51 = vld [vmem:[%s5043_s11 + $0x5c] sm:$0xf]  ;;  %v1151_v1 = vld [vmem:[%s5043_s11 + $0x18] sm:$0xf]  ;;  %v1344_v16 = vmul.bf16 %v1280_v39, %v1216_v38  ;;  %v1325_v56 = vld [vmem:[%s5045_s13 + $0xd0] sm:$0xf] }
 0x12e   : > { %v1152_v53 = vld [vmem:[%s5043_s11 + $0x1c] sm:$0xf]  ;;  %v4253_v6 = vld [vmem:[%s5044_s12 + $0xd8] sm:$0xf]  ;;  %v1326_v55 = vld [vmem:[%s5045_s13 + $0xd4] sm:$0xf] }
 0x12f   : > { %v4258_v8 = vld [vmem:[%s5044_s12 + $0xdc] sm:$0xf]  ;;  %v1327_v21 = vld [vmem:[%s5045_s13 + $0xd8] sm:$0xf]  ;;  %v1166_v42 = vld [vmem:[%s5043_s11 + $0x54] sm:$0xf] }
 0x130   : > { %v1328_v22 = vld [vmem:[%s5045_s13 + $0xdc] sm:$0xf]  ;;  %v1247_v23 = vld [vmem:[%s5044_s12 + $0x98] sm:$0xf]  ;;  %v4375_v43 = vld [vmem:[%s5044_s12 + $0x10] sm:$0xf] }
 0x131   : > { %v1248_v33 = vld [vmem:[%s5044_s12 + $0x9c] sm:$0xf]  ;;  %v1277_v4 = vld [vmem:[%s5045_s13 + $0x10] sm:$0xf]  ;;  %v4398_v5 = vld [vmem:[%s5045_s13 + $0x14] sm:$0xf] }
 0x132   : > { %v1312_v38 = vld [vmem:[%s5045_s13 + $0x9c] sm:$0xf] }
 0x1bd   : > { %v4069_v24 = vpop.f32.mrf.mxu1 }
 0x1bf   : > { %v901_v41 = vpop.f32.mrf.mxu1 }
 0x1c0   : > { %v902_v12 = vadd.f32 %v4121_v40, %v901_v41  ;;  %v1185_v41 = vld [vmem:[%s5043_s11 + $0xa0] sm:$0xf] }
 0x1c1   : > { %v3070_v58 = vpop.f32.mrf.mxu1  ;;  %v4280_v54 = vadd.bf16 %v1377_v37, %v1185_v41  ;;  %v4301_v41 = vadd.bf16 %v1343_v7, %v1151_v1  ;;  %v4309_v37 = vld [vmem:[%s5044_s12 + $0x50] sm:$0xf]  ;;  %v1183_v1 = vld [vmem:[%s5043_s11 + $0x98] sm:$0xf]  ;;  %v1184_v7 = vld [vmem:[%s5043_s11 + $0x9c] sm:$0xf] }
 0x1c2   : > { %v4278_v15 = vadd.f32 %v3070_v58, %v4121_v40  ;;  %v1262_v58 = vld [vmem:[%s5044_s12 + $0xd4] sm:$0xf] }
 0x1c3   : > { %v904_v29 = vpop.f32.mrf.mxu1 }
 0x1c4   : > { %v905_v61 = vadd.f32 %v4121_v40, %v904_v29  ;;  %v964_v29 = vmax.f32 %v902_v12, 0.0  ;;  %v4266_v12 = vadd.bf16 %v1394_v34, %v1202_v32  ;;  %v4282_v32 = vadd.bf16 %v1378_v60, %v1186_v35  ;;  %v1311_v34 = vld [vmem:[%s5045_s13 + $0x98] sm:$0xf] }
 0x1c5   : > { %v4230_v49 = vpop.f32.mrf.mxu1  ;;  %v4299_v60 = vadd.bf16 %v1360_v0, %v1168_v51  ;;  %v1199_v35 = vld [vmem:[%s5043_s11 + $0xd8] sm:$0xf]  ;;  %v1200_v51 = vld [vmem:[%s5043_s11 + $0xdc] sm:$0xf]  ;;  %v1392_v0 = vmul.bf16 %v1328_v22, %v4258_v8  ;;  %v4342_v8 = vadd.bf16 %v1344_v16, %v1152_v53  ;;  %v1376_v22 = vmul.bf16 %v1312_v38, %v1248_v33  ;;  %v4390_v38 = vld [vmem:[%s5044_s12 + $0x14] sm:$0xf] }
 0x1c6   : > { %v965_v59 = vmax.f32 %v905_v61, 0.0  ;;  %v967_v52 = vmax.f32 %v4278_v15, 0.0  ;;  %v2797_v53 = vcombine.low %v4245_v62, %v4262_v9  ;;  %v2821_v16 = vcombine.low %v4264_v63, %v4266_v12  ;;  %v1165_v15 = vld [vmem:[%s5043_s11 + $0x50] sm:$0xf]  ;;  %v1195_v12 = vld [vmem:[%s5043_s11 + $0xc8] sm:$0xf] }
 0x1c7   : > { %v4260_v61 = vpop.f32.mrf.mxu1 }
 0x1c8   : > { %v1470_v31 = vpack.c.bf16 %v965_v59, %v964_v29  ;;  %v4297_v59 = vadd.bf16 %v1359_v57, %v1167_v48  ;;  %v4314_v29 = vld [vmem:[%s5044_s12 + $0x54] sm:$0xf]  ;;  %v910_v48 = vadd.f32 %v4069_v24, %v4121_v40  ;;  %v1391_v57 = vmul.bf16 %v1327_v21, %v4253_v6  ;;  %v1293_v24 = vld [vmem:[%s5045_s13 + $0x50] sm:$0xf] }
 0x1c9   : > { %v4293_v39 = vpop.f32.mrf.mxu1  ;;  %v4338_v6 = vld [vmem:[%s5044_s12 + $0xd0] sm:$0xf]  ;;  %v1375_v21 = vmul.bf16 %v1311_v34, %v1247_v23  ;;  %v2813_v23 = vcombine.low %v4280_v54, %v4282_v32  ;;  %v1357_v33 = vmul.bf16 %v1293_v24, %v4309_v37  ;;  %v926_v54 = vadd.f32 %v4230_v49, %v4121_v40 }
 0x1ca   : > { %1692 = vmatmul.mubr.bf16.vlgmr.msra.gmra.mxu0 %v1470_v31  ;;  %1805 = vmatmul.mubr.bf16.vlgmr.msra.gmra.mxu1 %v1470_v31  ;;  %v1294_v31 = vld [vmem:[%s5045_s13 + $0x54] sm:$0xf]  ;;  %v1197_v37 = vld [vmem:[%s5043_s11 + $0xd0] sm:$0xf]  ;;  %v1389_v24 = vmul.bf16 %v1325_v56, %v4338_v6 }
 0x1cb   : > { %1701 = vmatprep.mubr.bf16.mxu0 %v3268_v36  ;;  %1814 = vmatprep.mubr.bf16.mxu1 %v3268_v36  ;;  %v920_v2 = vpop.f32.mrf.mxu1  ;;  %v1358_v34 = vmul.bf16 %v1294_v31, %v4314_v29  ;;  %v1198_v29 = vld [vmem:[%s5043_s11 + $0xd4] sm:$0xf]  ;;  %v1390_v31 = vmul.bf16 %v1326_v55, %v1262_v58  ;;  %v1309_v56 = vld [vmem:[%s5045_s13 + $0x90] sm:$0xf] }
 0x1cc   : > { %2860 = vmatpush3.bf16.msra.mxu0 %v2800_v44  ;;  %2924 = vmatpush3.bf16.msra.mxu1 %v2816_v45  ;;  %v5060_v44 = vcombine.low %v4048_v17, %v4050_v18  ;;  %v966_v17 = vmax.f32 %v910_v48, 0.0  ;;  %v4400_v18 = vadd.bf16 %v1391_v57, %v1199_v35  ;;  %v4413_v45 = vadd.bf16 %v1375_v21, %v1183_v1  ;;  %v1149_v48 = vld [vmem:[%s5043_s11 + $0x10] sm:$0xf]  ;;  %v1246_v55 = vld [vmem:[%s5044_s12 + $0x94] sm:$0xf] }
 0x1cd   : > { %2861 = vmatprep.subr.bf16.mxu0 %v5059_v3  ;;  %v2796_v3 = vcombine.low %v4301_v41, %v4342_v8  ;;  %v4415_v35 = vadd.bf16 %v1376_v22, %v1184_v7  ;;  %v1245_v57 = vld [vmem:[%s5044_s12 + $0x90] sm:$0xf]  ;;  %v5062_v1 = vcombine.low %v4052_v19, %v4054_v20  ;;  %v1341_v7 = vmul.bf16 %v1277_v4, %v4375_v43  ;;  %v1310_v6 = vld [vmem:[%s5045_s13 + $0x94] sm:$0xf]  ;;  %v4446_v21 = vld [vmem:[%s5044_s12 + $0x4c] sm:$0xf] }
 0x1ce   : > { %2925 = vmatprep.subr.bf16.mxu1 %v5060_v44  ;;  %v4411_v44 = vadd.bf16 %v1392_v0, %v1200_v51  ;;  %v1471_v58 = vpack.c.bf16 %v967_v52, %v966_v17  ;;  %v921_v51 = vadd.f32 %v4121_v40, %v920_v2  ;;  %v5061_v0 = vcombine.low %v4035_v10, %v4037_v11  ;;  %v1227_v52 = vld [vmem:[%s5044_s12 + $0x48] sm:$0xf]  ;;  %v4448_v10 = vpop.f32.mrf.mxu1  ;;  %v1150_v43 = vld [vmem:[%s5043_s11 + $0x14] sm:$0xf] }
 0x1cf   : > { %v5063_v11 = vcombine.low %v4071_v25, %v4073_v26  ;;  %v5064_v19 = vcombine.low %v4127_v46, %v4129_v47  ;;  %v4456_v20 = vadd.bf16 %v1357_v33, %v1165_v15  ;;  %v4458_v22 = vadd.bf16 %v1358_v34, %v1166_v42  ;;  %v1291_v25 = vld [vmem:[%s5045_s13 + $0x48] sm:$0xf]  ;;  %v1292_v26 = vld [vmem:[%s5045_s13 + $0x4c] sm:$0xf]  ;;  %v1181_v33 = vld [vmem:[%s5043_s11 + $0x90] sm:$0xf] }
 0x1d0   : > { %2862 = vmatpush3.bf16.msra.mxu0 %v5061_v0  ;;  %2926 = vmatpush3.bf16.msra.mxu1 %v5062_v1  ;;  %v1342_v2 = vmul.bf16 %v4398_v5, %v4390_v38  ;;  %v1259_v46 = vld [vmem:[%s5044_s12 + $0xc8] sm:$0xf]  ;;  %v918_v47 = vadd.f32 %v4121_v40, %v4260_v61  ;;  %v4476_v15 = vadd.bf16 %v1389_v24, %v1197_v37  ;;  %v1260_v34 = vld [vmem:[%s5044_s12 + $0xcc] sm:$0xf]  ;;  %v1182_v5 = vld [vmem:[%s5043_s11 + $0x94] sm:$0xf]  ;;  %v933_v0 = vpop.f32.mrf.mxu1 }
 0x1d1   : > { %2863 = vmatprep.subr.bf16.mxu0 %v5063_v11  ;;  %2927 = vmatprep.subr.bf16.mxu1 %v5064_v19  ;;  %v4478_v42 = vadd.bf16 %v1390_v31, %v1198_v29  ;;  %v1323_v38 = vld [vmem:[%s5045_s13 + $0xc8] sm:$0xf]  ;;  %v1324_v61 = vld [vmem:[%s5045_s13 + $0xcc] sm:$0xf]  ;;  %v2820_v4 = vcombine.low %v4400_v18, %v4411_v44  ;;  %v1373_v17 = vmul.bf16 %v1309_v56, %v1245_v57  ;;  %v969_v31 = vmax.f32 %v921_v51, 0.0 }
 0x1d2   : > { %1702 = vmatmul.mubr.bf16.gmra.mxu0 %v1471_v58  ;;  %1815 = vmatmul.mubr.bf16.gmra.mxu1 %v1471_v58  ;;  %v1374_v37 = vmul.bf16 %v1310_v6, %v1246_v55  ;;  %v1211_v29 = vld [vmem:[%s5044_s12 + $0x8] sm:$0xf]  ;;  %v1212_v24 = vld [vmem:[%s5044_s12 + $0xc] sm:$0xf]  ;;  %v5065_v58 = vcombine.low %v4075_v27, %v4077_v28  ;;  %v5066_v18 = vcombine.low %v4184_v13, %v4186_v14 }
 0x1d3   : > { %1711 = vmatprep.mubr.bf16.mxu0 %v3268_v36  ;;  %1824 = vmatprep.mubr.bf16.mxu1 %v3268_v36  ;;  %v2812_v44 = vcombine.low %v4413_v45, %v4415_v35  ;;  %v1405_v57 = vadd.bf16 %v1341_v7, %v1149_v48  ;;  %v1355_v55 = vmul.bf16 %v1291_v25, %v1227_v52  ;;  %v1275_v56 = vld [vmem:[%s5045_s13 + $0x8] sm:$0xf]  ;;  %v1276_v51 = vld [vmem:[%s5045_s13 + $0xc] sm:$0xf]  ;;  %v968_v48 = vmax.f32 %v918_v47, 0.0 }
 0x1d4   : > { %2864 = vmatpush3.bf16.msra.mxu0 %v5065_v58  ;;  %2928 = vmatpush3.bf16.msra.mxu1 %v5066_v18  ;;  %v5067_v27 = vcombine.low %v4218_v30, %v4232_v50  ;;  %v1163_v28 = vld [vmem:[%s5043_s11 + $0x48] sm:$0xf]  ;;  %v1164_v13 = vld [vmem:[%s5043_s11 + $0x4c] sm:$0xf]  ;;  %v1356_v14 = vmul.bf16 %v1292_v26, %v4446_v21  ;;  %v1387_v45 = vmul.bf16 %v1323_v38, %v1259_v46  ;;  %v970_v46 = vmax.f32 %v926_v54, 0.0 }
 0x1d5   : > { %2929 = vmatprep.subr.bf16.mxu1 %v2821_v16  ;;  %v1388_v35 = vmul.bf16 %v1324_v61, %v1260_v34  ;;  %v2803_v30 = vcombine.low %v4456_v20, %v4458_v22  ;;  %v1406_v50 = vadd.bf16 %v1342_v2, %v1150_v43  ;;  %v2819_v63 = vcombine.low %v4476_v15, %v4478_v42  ;;  %v1196_v16 = vld [vmem:[%s5043_s11 + $0xcc] sm:$0xf]  ;;  %v1147_v20 = vld [vmem:[%s5043_s11 + $0x8] sm:$0xf]  ;;  %v3078_v43 = vpop.f32.mrf.mxu1 }
 0x1d6   : > { %2865 = vmatprep.subr.bf16.mxu0 %v5067_v27  ;;  %v1437_v1 = vadd.bf16 %v1373_v17, %v1181_v33  ;;  %v1438_v7 = vadd.bf16 %v1374_v37, %v1182_v5  ;;  %v1339_v6 = vmul.bf16 %v1275_v56, %v1211_v29  ;;  %v1340_v52 = vmul.bf16 %v1276_v51, %v1212_v24  ;;  %v1148_v22 = vld [vmem:[%s5043_s11 + $0xc] sm:$0xf]  ;;  %v1243_v27 = vld [vmem:[%s5044_s12 + $0x88] sm:$0xf] }
 0x1d7   : > { %v929_v21 = vadd.f32 %v4293_v39, %v4121_v40  ;;  %v1472_v11 = vpack.c.bf16 %v969_v31, %v968_v48  ;;  %v1419_v19 = vadd.bf16 %v1355_v55, %v1163_v28  ;;  %v5068_v39 = vcombine.low %v4297_v59, %v4299_v60  ;;  %v936_v25 = vpop.f32.mrf.mxu1  ;;  %v1307_v28 = vld [vmem:[%s5045_s13 + $0x88] sm:$0xf] }
 0x1d8   : > { %2866 = vmatpush3.bf16.msra.mxu0 %v2797_v53  ;;  %2930 = vmatpush3.bf16.msra.mxu1 %v2813_v23  ;;  %v1420_v62 = vadd.bf16 %v1356_v14, %v1164_v13  ;;  %v1451_v9 = vadd.bf16 %v1387_v45, %v1195_v12  ;;  %v1452_v53 = vadd.bf16 %v1388_v35, %v1196_v16  ;;  %v1179_v14 = vld [vmem:[%s5043_s11 + $0x88] sm:$0xf]  ;;  %v1180_v45 = vld [vmem:[%s5043_s11 + $0x8c] sm:$0xf]  ;;  %v1290_v16 = vld [vmem:[%s5045_s13 + $0x44] sm:$0xf] }
 0x1d9   : > { %2867 = vmatprep.subr.bf16.mxu0 %v5068_v39  ;;  %2931 = vmatprep.subr.bf16.mxu1 %v2820_v4  ;;  %v1403_v32 = vadd.bf16 %v1339_v6, %v1147_v20  ;;  %v1404_v23 = vadd.bf16 %v1340_v52, %v1148_v22  ;;  %v971_v2 = vmax.f32 %v929_v21, 0.0  ;;  %v2795_v59 = vcombine.low %v1405_v57, %v1406_v50  ;;  %v3081_v34 = vpop.f32.mrf.mxu1  ;;  %v1226_v50 = vld [vmem:[%s5044_s12 + $0x44] sm:$0xf]  ;;  %v1161_v52 = vld [vmem:[%s5043_s11 + $0x40] sm:$0xf] }
 0x1da   : > { %1712 = vmatmul.mubr.bf16.gmra.mxu0 %v1472_v11  ;;  %1825 = vmatmul.mubr.bf16.gmra.mxu1 %v1472_v11  ;;  %v2811_v60 = vcombine.low %v1437_v1, %v1438_v7  ;;  %v2802_v49 = vcombine.low %v1419_v19, %v1420_v62  ;;  %v2818_v26 = vcombine.low %v1451_v9, %v1452_v53  ;;  %v1209_v7 = vld [vmem:[%s5044_s12] sm:$0xf]  ;;  %v1210_v6 = vld [vmem:[%s5044_s12 + $0x4] sm:$0xf] }
 0x1db   : > { %1721 = vmatprep.mubr.bf16.mxu0 %v3268_v36  ;;  %1834 = vmatprep.mubr.bf16.mxu1 %v3268_v36  ;;  %v2794_v47 = vcombine.low %v1403_v32, %v1404_v23  ;;  %v1473_v15 = vpack.c.bf16 %v971_v2, %v970_v46  ;;  %v934_v42 = vadd.f32 %v4121_v40, %v933_v0  ;;  %v1162_v21 = vld [vmem:[%s5043_s11 + $0x44] sm:$0xf]  ;;  %v1273_v19 = vld [vmem:[%s5045_s13] sm:$0xf] }
 0x1dc   : > { %2868 = vmatpush3.bf16.msra.mxu0 %v2796_v3  ;;  %2932 = vmatpush3.bf16.msra.mxu1 %v2812_v44  ;;  %v937_v33 = vadd.f32 %v4121_v40, %v936_v25  ;;  %v949_v3 = vpop.f32.mrf.mxu1  ;;  %v942_v38 = vadd.f32 %v4448_v10, %v4121_v40  ;;  %v945_v61 = vadd.f32 %v3078_v43, %v4121_v40  ;;  %v1145_v43 = vld [vmem:[%s5043_s11] sm:$0xf]  ;;  %v1146_v39 = vld [vmem:[%s5043_s11 + $0x4] sm:$0xf] }
 0x1dd   : > { %2869 = vmatprep.subr.bf16.mxu0 %v2803_v30  ;;  %2933 = vmatprep.subr.bf16.mxu1 %v2819_v63  ;;  %v972_v41 = vmax.f32 %v934_v42, 0.0  ;;  %v950_v31 = vadd.f32 %v4121_v40, %v949_v3  ;;  %v958_v44 = vadd.f32 %v3081_v34, %v4121_v40  ;;  %v1371_v13 = vmul.bf16 %v1307_v28, %v1243_v27  ;;  %v1225_v30 = vld [vmem:[%s5044_s12 + $0x40] sm:$0xf]  ;;  %v1274_v62 = vld [vmem:[%s5045_s13 + $0x4] sm:$0xf] }
 0x1de   : > { %v973_v8 = vmax.f32 %v937_v33, 0.0  ;;  %v3082_v5 = vpop.f32.mrf.mxu1  ;;  %v974_v17 = vmax.f32 %v942_v38, 0.0  ;;  %v975_v37 = vmax.f32 %v945_v61, 0.0  ;;  %v1289_v63 = vld [vmem:[%s5045_s13 + $0x40] sm:$0xf]  ;;  %v1354_v11 = vmul.bf16 %v1290_v16, %v1226_v50 }
 0x1df   : > { %v976_v10 = vmax.f32 %v950_v31, 0.0  ;;  %v961_v57 = vadd.f32 %v3082_v5, %v4121_v40  ;;  %v978_v56 = vmax.f32 %v958_v44, 0.0  ;;  %v1435_v48 = vadd.bf16 %v1371_v13, %v1179_v14  ;;  %v1193_v32 = vld [vmem:[%s5043_s11 + $0xc0] sm:$0xf]  ;;  %v1194_v23 = vld [vmem:[%s5043_s11 + $0xc4] sm:$0xf] }
 0x1e0   : > { %2870 = vmatpush3.bf16.msra.mxu0 %v2795_v59  ;;  %2934 = vmatpush3.bf16.msra.mxu1 %v2811_v60  ;;  %v1474_v4 = vpack.c.bf16 %v973_v8, %v972_v41  ;;  %v952_v29 = vpop.f32.mrf.mxu1  ;;  %v1475_v24 = vpack.c.bf16 %v975_v37, %v974_v17  ;;  %v1353_v1 = vmul.bf16 %v1289_v63, %v1225_v30  ;;  %v1257_v2 = vld [vmem:[%s5044_s12 + $0xc0] sm:$0xf]  ;;  %v1258_v60 = vld [vmem:[%s5044_s12 + $0xc4] sm:$0xf] }
 0x1e1   : > { %2871 = vmatprep.subr.bf16.mxu0 %v2802_v49  ;;  %2935 = vmatprep.subr.bf16.mxu1 %v2818_v26  ;;  %v953_v58 = vadd.f32 %v4121_v40, %v952_v29  ;;  %v979_v51 = vmax.f32 %v961_v57, 0.0  ;;  %v1244_v40 = vld [vmem:[%s5044_s12 + $0x8c] sm:$0xf]  ;;  %v1337_v9 = vmul.bf16 %v1273_v19, %v1209_v7  ;;  %v1418_v53 = vadd.bf16 %v1354_v11, %v1162_v21  ;;  %v1321_v25 = vld [vmem:[%s5045_s13 + $0xc0] sm:$0xf] }
 0x1e2   : > { %1722 = vmatmul.mubr.bf16.gmra.mxu0 %v1473_v15  ;;  %1835 = vmatmul.mubr.bf16.gmra.mxu1 %v1473_v15  ;;  %v1417_v22 = vadd.bf16 %v1353_v1, %v1161_v52  ;;  %v1338_v54 = vmul.bf16 %v1274_v62, %v1210_v6  ;;  %v1322_v49 = vld [vmem:[%s5045_s13 + $0xc4] sm:$0xf]  ;;  %v1177_v42 = vld [vmem:[%s5043_s11 + $0x80] sm:$0xf] }
 0x1e3   : > { %1731 = vmatprep.mubr.bf16.mxu0 %v3268_v36  ;;  %1844 = vmatprep.mubr.bf16.mxu1 %v3268_v36  ;;  %v977_v18 = vmax.f32 %v953_v58, 0.0  ;;  %v1477_v0 = vpack.c.bf16 %v979_v51, %v978_v56  ;;  %v1401_v59 = vadd.bf16 %v1337_v9, %v1145_v43  ;;  %v1386_v15 = vmul.bf16 %v1322_v49, %v1258_v60  ;;  %v1241_v33 = vld [vmem:[%s5044_s12 + $0x80] sm:$0xf]  ;;  %v1242_v34 = vld [vmem:[%s5044_s12 + $0x84] sm:$0xf] }
 0x1e4   : > { %2872 = vmatpush3.bf16.msra.mxu0 %v2794_v47  ;;  %v2801_v26 = vcombine.low %v1417_v22, %v1418_v53  ;;  %v1402_v46 = vadd.bf16 %v1338_v54, %v1146_v39  ;;  %v1385_v47 = vmul.bf16 %v1321_v25, %v1257_v2  ;;  %v1305_v41 = vld [vmem:[%s5045_s13 + $0x80] sm:$0xf]  ;;  %v1306_v8 = vld [vmem:[%s5045_s13 + $0x84] sm:$0xf]  ;;  %v1479_v58 = vlaneseq }
 0x1e5   : > { %v1476_v55 = vpack.c.bf16 %v977_v18, %v976_v10  ;;  %v1450_v61 = vadd.bf16 %v1386_v15, %v1194_v23  ;;  %v1369_v5 = vmul.bf16 %v1305_v41, %v1241_v33  ;;  %v1370_v17 = vmul.bf16 %v1306_v8, %v1242_v34  ;;  %v1141_v10 = vld [vmem:[%s5041_s9] sm:$0xf] }
 0x1e6   : > { %2873 = vmatprep.subr.bf16.mxu0 %v2801_v26  ;;  %v2793_v3 = vcombine.low %v1401_v59, %v1402_v46  ;;  %v1449_v38 = vadd.bf16 %v1385_v47, %v1193_v32  ;;  %v1142_v18 = vld [vmem:[%s5042_s10] sm:$0xf]  ;;  %v4679_v57 = vshrl.u32 %v1479_v58, 7 }
 0x1e7   : > { %v1433_v29 = vadd.bf16 %v1369_v5, %v1177_v42  ;;  %v1143_v44 = vmul.f32 %v1142_v18, %v1141_v10 }
 0x1e8   : > { %2874 = vmatpush3.bf16.msra.mxu0 %v2793_v3  ;;  %v2817_v37 = vcombine.low %v1449_v38, %v1450_v61  ;;  %v1485_v56 = vsub.s32 1, %v4679_v57  ;;  %v1493_v51 = vsub.s32 3, %v4679_v57  ;;  %v1481_v27 = vsub.s32 0, %v4679_v57 }
 0x1ea   : > { %1732 = vmatmul.mubr.bf16.gmra.mxu0 %v1474_v4  ;;  %1845 = vmatmul.mubr.bf16.gmra.mxu1 %v1474_v4  ;;  %v1178_v4 = vld [vmem:[%s5043_s11 + $0x84] sm:$0xf] }
 0x1eb   : > { %1741 = vmatprep.mubr.bf16.mxu0 %v3268_v36  ;;  %1854 = vmatprep.mubr.bf16.mxu1 %v3268_v36 }
 0x1f2   : > { %1742 = vmatmul.mubr.bf16.gmra.mxu0 %v1475_v24  ;;  %1855 = vmatmul.mubr.bf16.gmra.mxu1 %v1475_v24  ;;  %v1434_v24 = vadd.bf16 %v1370_v17, %v1178_v4 }
 0x1f3   : > { %1751 = vmatprep.mubr.bf16.mxu0 %v3268_v36  ;;  %1864 = vmatprep.mubr.bf16.mxu1 %v3268_v36 }
 0x1f4   : > { %v2809_v31 = vcombine.low %v1433_v29, %v1434_v24 }
 0x1fa   : > { %1752 = vmatmul.mubr.bf16.gmra.mxu0 %v1476_v55  ;;  %1865 = vmatmul.mubr.bf16.gmra.mxu1 %v1476_v55  ;;  %v1140_v55 = vld [vmem:[%s5040_s8] sm:$0xf] }
 0x1fb   : > { %1761 = vmatprep.mubr.bf16.mxu0 %v3268_v36  ;;  %1874 = vmatprep.mubr.bf16.mxu1 %v3268_v36  ;;  %v1308_v36 = vld [vmem:[%s5045_s13 + $0x8c] sm:$0xf] }
 0x1fc   : > { %v1372_v35 = vmul.bf16 %v1308_v36, %v1244_v40  ;;  %v1489_v40 = vsub.s32 2, %v4679_v57 }
 0x1fe   : > { %v1436_v12 = vadd.bf16 %v1372_v35, %v1180_v45 }
 0x200   : > { %v2810_v20 = vcombine.low %v1435_v48, %v1436_v12 }
 0x202   : > { %1762 = vmatmul.mubr.bf16.gmra.mxu0 %v1477_v0  ;;  %1875 = vmatmul.mubr.bf16.gmra.mxu1 %v1477_v0  ;;  %v1144_v0 = vadd.f32 %v1143_v44, %v1140_v55 }
 0x203   : > { %2936 = vmatpush3.bf16.msra.mxu1 %v2810_v20 }
 0x204   : > { %2937 = vmatprep.subr.bf16.mxu1 %v2817_v37  ;;  %v4688_v13 = vrot.slane %v1144_v0, %v1485_v56  ;;  %v4690_v14 = vrot.slane %v1144_v0, %v1493_v51  ;;  %v4694_v45 = vrot.slane %v1144_v0, %v1481_v27  ;;  %v4696_v35 = vrot.slane %v1144_v0, %v1489_v40 }
 0x207   : > { %2938 = vmatpush3.bf16.msra.mxu1 %v2809_v31 }
 0x28a   : > { %v1693_v28 = vpop.f32.mrf.mxu0  ;;  %v1806_v36 = vpop.f32.mrf.mxu1 }
 0x28b   : > { %v1694_v6 = vadd.f32 %v1693_v28, %v4694_v45  ;;  %v1807_v52 = vadd.f32 %v1806_v36, %v4696_v35 }
 0x28c   : > { %v1695_v48 = vpop.f32.mrf.mxu0  ;;  %v1808_v30 = vpop.f32.mrf.mxu1 }
 0x28d   : > { %v1696_v12 = vadd.f32 %v1695_v48, %v4688_v13  ;;  %v1809_v16 = vadd.f32 %v1808_v30, %v4690_v14  ;;  %v1885_v23 = vmax.f32 %v1694_v6, 0.0  ;;  %v1887_v2 = vmax.f32 %v1807_v52, 0.0 }
 0x28e   : > { %v1697_v50 = vpop.f32.mrf.mxu0  ;;  %v1810_v63 = vpop.f32.mrf.mxu1 }
 0x28f   : > { %v1698_v1 = vadd.f32 %v1697_v50, %v4694_v45  ;;  %v1811_v7 = vadd.f32 %v1810_v63, %v4696_v35  ;;  %v1886_v9 = vmax.f32 %v1696_v12, 0.0  ;;  %v1888_v53 = vmax.f32 %v1809_v16, 0.0 }
 0x290   : > { %v1699_v21 = vpop.f32.mrf.mxu0  ;;  %v1812_v11 = vpop.f32.mrf.mxu1 }
 0x291   : > { %v1700_v19 = vadd.f32 %v1699_v21, %v4688_v13  ;;  %v1813_v20 = vadd.f32 %v1812_v11, %v4690_v14  ;;  %v1889_v22 = vmax.f32 %v1698_v1, 0.0  ;;  %v1891_v43 = vmax.f32 %v1811_v7, 0.0 }
 0x292   : > { %v1703_v39 = vpop.f32.mrf.mxu0  ;;  %v1816_v62 = vpop.f32.mrf.mxu1 }
 0x293   : > { %v1890_v54 = vmax.f32 %v1700_v19, 0.0  ;;  %v1892_v32 = vmax.f32 %v1813_v20, 0.0  ;;  %v1949_v26 = vpack.c.bf16 %v1889_v22, %v1885_v23  ;;  %v1951_v46 = vpack.c.bf16 %v1891_v43, %v1887_v2 }
 0x294   : > { %v1705_v59 = vpop.f32.mrf.mxu0  ;;  %v1818_v60 = vpop.f32.mrf.mxu1  ;;  %v1704_v8 = vadd.f32 %v1703_v39, %v4694_v45  ;;  %v1817_v3 = vadd.f32 %v1816_v62, %v4696_v35 }
 0x295   : > { %v1950_v25 = vpack.c.bf16 %v1890_v54, %v1886_v9  ;;  %v1952_v49 = vpack.c.bf16 %v1892_v32, %v1888_v53  ;;  %v1706_v47 = vadd.f32 %v1705_v59, %v4688_v13  ;;  %v1819_v33 = vadd.f32 %v1818_v60, %v4690_v14 }
 0x296   : > { %v1707_v15 = vpop.f32.mrf.mxu0  ;;  %v1820_v42 = vpop.f32.mrf.mxu1  ;;  %v1893_v44 = vmax.f32 %v1704_v8, 0.0  ;;  %v1895_v55 = vmax.f32 %v1817_v3, 0.0 }
 0x297   : > { %v1708_v34 = vadd.f32 %v1707_v15, %v4694_v45  ;;  %v1821_v41 = vadd.f32 %v1820_v42, %v4696_v35  ;;  %2211 = vmatprep.mubr.bf16.mxu0 %v1950_v25  ;;  %2308 = vmatprep.mubr.bf16.mxu1 %v1952_v49  ;;  %v1894_v31 = vmax.f32 %v1706_v47, 0.0  ;;  %v1896_v58 = vmax.f32 %v1819_v33, 0.0 }
 0x298   : > { %v1709_v38 = vpop.f32.mrf.mxu0  ;;  %v1822_v61 = vpop.f32.mrf.mxu1  ;;  %2212 = vmatmul.mubr.bf16.vlgmr.msra.gmra.mxu0 %v1949_v26  ;;  %2309 = vmatmul.mubr.bf16.vlgmr.msra.gmra.mxu1 %v1951_v46 }
 0x299   : > { %v1710_v4 = vadd.f32 %v1709_v38, %v4688_v13  ;;  %v1823_v5 = vadd.f32 %v1822_v61, %v4690_v14  ;;  %v1897_v17 = vmax.f32 %v1708_v34, 0.0  ;;  %v1899_v37 = vmax.f32 %v1821_v41, 0.0 }
 0x29a   : > { %v1713_v29 = vpop.f32.mrf.mxu0  ;;  %v1826_v24 = vpop.f32.mrf.mxu1 }
 0x29b   : > { %v1898_v10 = vmax.f32 %v1710_v4, 0.0  ;;  %v1900_v18 = vmax.f32 %v1823_v5, 0.0  ;;  %v1953_v28 = vpack.c.bf16 %v1897_v17, %v1893_v44  ;;  %v1955_v36 = vpack.c.bf16 %v1899_v37, %v1895_v55 }
 0x29c   : > { %v1715_v56 = vpop.f32.mrf.mxu0  ;;  %v1828_v51 = vpop.f32.mrf.mxu1  ;;  %v1714_v1 = vadd.f32 %v1713_v29, %v4694_v45  ;;  %v1827_v7 = vadd.f32 %v1826_v24, %v4696_v35 }
 0x29d   : > { %v1954_v0 = vpack.c.bf16 %v1898_v10, %v1894_v31  ;;  %v1956_v40 = vpack.c.bf16 %v1900_v18, %v1896_v58  ;;  %v1716_v48 = vadd.f32 %v1715_v56, %v4688_v13  ;;  %v1829_v63 = vadd.f32 %v1828_v51, %v4690_v14 }
 0x29e   : > { %v1717_v30 = vpop.f32.mrf.mxu0  ;;  %v1830_v50 = vpop.f32.mrf.mxu1  ;;  %v1901_v54 = vmax.f32 %v1714_v1, 0.0  ;;  %v1903_v32 = vmax.f32 %v1827_v7, 0.0 }
 0x29f   : > { %v1718_v12 = vadd.f32 %v1717_v30, %v4694_v45  ;;  %v1831_v16 = vadd.f32 %v1830_v50, %v4696_v35  ;;  %2219 = vmatprep.mubr.bf16.mxu0 %v1954_v0  ;;  %2316 = vmatprep.mubr.bf16.mxu1 %v1956_v40  ;;  %v1902_v39 = vmax.f32 %v1716_v48, 0.0  ;;  %v1904_v62 = vmax.f32 %v1829_v63, 0.0 }
 0x2a0   : > { %v1719_v6 = vpop.f32.mrf.mxu0  ;;  %v1832_v52 = vpop.f32.mrf.mxu1  ;;  %2220 = vmatmul.mubr.bf16.gmra.mxu0 %v1953_v28  ;;  %2317 = vmatmul.mubr.bf16.gmra.mxu1 %v1955_v36 }
 0x2a1   : > { %v1720_v21 = vadd.f32 %v1719_v6, %v4688_v13  ;;  %v1833_v11 = vadd.f32 %v1832_v52, %v4690_v14  ;;  %v1905_v19 = vmax.f32 %v1718_v12, 0.0  ;;  %v1907_v20 = vmax.f32 %v1831_v16, 0.0 }
 0x2a2   : > { %v1723_v22 = vpop.f32.mrf.mxu0  ;;  %v1836_v43 = vpop.f32.mrf.mxu1 }
 0x2a3   : > { %v1906_v9 = vmax.f32 %v1720_v21, 0.0  ;;  %v1908_v53 = vmax.f32 %v1833_v11, 0.0  ;;  %v1957_v25 = vpack.c.bf16 %v1905_v19, %v1901_v54  ;;  %v1959_v49 = vpack.c.bf16 %v1907_v20, %v1903_v32 }
 0x2a4   : > { %v1725_v23 = vpop.f32.mrf.mxu0  ;;  %v1838_v2 = vpop.f32.mrf.mxu1  ;;  %v1724_v34 = vadd.f32 %v1723_v22, %v4694_v45  ;;  %v1837_v41 = vadd.f32 %v1836_v43, %v4696_v35 }
 0x2a5   : > { %v1958_v59 = vpack.c.bf16 %v1906_v9, %v1902_v39  ;;  %v1960_v60 = vpack.c.bf16 %v1908_v53, %v1904_v62  ;;  %v1726_v26 = vadd.f32 %v1725_v23, %v4688_v13  ;;  %v1839_v15 = vadd.f32 %v1838_v2, %v4690_v14 }
 0x2a6   : > { %v1727_v46 = vpop.f32.mrf.mxu0  ;;  %v1840_v47 = vpop.f32.mrf.mxu1  ;;  %v1909_v10 = vmax.f32 %v1724_v34, 0.0  ;;  %v1911_v18 = vmax.f32 %v1837_v41, 0.0 }
 0x2a7   : > { %v1728_v42 = vadd.f32 %v1727_v46, %v4694_v45  ;;  %v1841_v33 = vadd.f32 %v1840_v47, %v4696_v35  ;;  %2227 = vmatprep.mubr.bf16.mxu0 %v1958_v59  ;;  %2324 = vmatprep.mubr.bf16.mxu1 %v1960_v60  ;;  %v1910_v29 = vmax.f32 %v1726_v26, 0.0  ;;  %v1912_v24 = vmax.f32 %v1839_v15, 0.0 }
 0x2a8   : > { %v1729_v8 = vpop.f32.mrf.mxu0  ;;  %v1842_v3 = vpop.f32.mrf.mxu1  ;;  %2228 = vmatmul.mubr.bf16.gmra.mxu0 %v1957_v25  ;;  %2325 = vmatmul.mubr.bf16.gmra.mxu1 %v1959_v49 }
 0x2a9   : > { %v1730_v38 = vadd.f32 %v1729_v8, %v4688_v13  ;;  %v1843_v61 = vadd.f32 %v1842_v3, %v4690_v14  ;;  %v1913_v4 = vmax.f32 %v1728_v42, 0.0  ;;  %v1915_v5 = vmax.f32 %v1841_v33, 0.0 }
 0x2aa   : > { %v1733_v17 = vpop.f32.mrf.mxu0  ;;  %v1846_v37 = vpop.f32.mrf.mxu1 }
 0x2ab   : > { %v1914_v31 = vmax.f32 %v1730_v38, 0.0  ;;  %v1916_v58 = vmax.f32 %v1843_v61, 0.0  ;;  %v1961_v0 = vpack.c.bf16 %v1913_v4, %v1909_v10  ;;  %v1963_v40 = vpack.c.bf16 %v1915_v5, %v1911_v18 }
 0x2ac   : > { %v1735_v44 = vpop.f32.mrf.mxu0  ;;  %v1848_v55 = vpop.f32.mrf.mxu1  ;;  %v1734_v12 = vadd.f32 %v1733_v17, %v4694_v45  ;;  %v1847_v16 = vadd.f32 %v1846_v37, %v4696_v35 }
 0x2ad   : > { %v1962_v56 = vpack.c.bf16 %v1914_v31, %v1910_v29  ;;  %v1964_v51 = vpack.c.bf16 %v1916_v58, %v1912_v24  ;;  %v1736_v28 = vadd.f32 %v1735_v44, %v4688_v13  ;;  %v1849_v30 = vadd.f32 %v1848_v55, %v4690_v14 }
 0x2ae   : > { %v1737_v36 = vpop.f32.mrf.mxu0  ;;  %v1850_v48 = vpop.f32.mrf.mxu1  ;;  %v1917_v9 = vmax.f32 %v1734_v12, 0.0  ;;  %v1919_v53 = vmax.f32 %v1847_v16, 0.0 }
 0x2af   : > { %v1738_v50 = vadd.f32 %v1737_v36, %v4694_v45  ;;  %v1851_v63 = vadd.f32 %v1850_v48, %v4696_v35  ;;  %2235 = vmatprep.mubr.bf16.mxu0 %v1962_v56  ;;  %2332 = vmatprep.mubr.bf16.mxu1 %v1964_v51  ;;  %v1918_v22 = vmax.f32 %v1736_v28, 0.0  ;;  %v1920_v43 = vmax.f32 %v1849_v30, 0.0 }
 0x2b0   : > { %v1739_v1 = vpop.f32.mrf.mxu0  ;;  %v1852_v7 = vpop.f32.mrf.mxu1  ;;  %2236 = vmatmul.mubr.bf16.gmra.mxu0 %v1961_v0  ;;  %2333 = vmatmul.mubr.bf16.gmra.mxu1 %v1963_v40 }
 0x2b1   : > { %v1740_v6 = vadd.f32 %v1739_v1, %v4688_v13  ;;  %v1853_v52 = vadd.f32 %v1852_v7, %v4690_v14  ;;  %v1921_v21 = vmax.f32 %v1738_v50, 0.0  ;;  %v1923_v11 = vmax.f32 %v1851_v63, 0.0 }
 0x2b2   : > { %v1743_v19 = vpop.f32.mrf.mxu0  ;;  %v1856_v20 = vpop.f32.mrf.mxu1 }
 0x2b3   : > { %v1922_v39 = vmax.f32 %v1740_v6, 0.0  ;;  %v1924_v62 = vmax.f32 %v1853_v52, 0.0  ;;  %v1965_v59 = vpack.c.bf16 %v1921_v21, %v1917_v9  ;;  %v1967_v60 = vpack.c.bf16 %v1923_v11, %v1919_v53 }
 0x2b4   : > { %v1745_v54 = vpop.f32.mrf.mxu0  ;;  %v1858_v32 = vpop.f32.mrf.mxu1  ;;  %v1744_v42 = vadd.f32 %v1743_v19, %v4694_v45  ;;  %v1857_v33 = vadd.f32 %v1856_v20, %v4696_v35 }
 0x2b5   : > { %v1966_v23 = vpack.c.bf16 %v1922_v39, %v1918_v22  ;;  %v1968_v2 = vpack.c.bf16 %v1924_v62, %v1920_v43  ;;  %v1746_v25 = vadd.f32 %v1745_v54, %v4688_v13  ;;  %v1859_v46 = vadd.f32 %v1858_v32, %v4690_v14 }
 0x2b6   : > { %v1747_v49 = vpop.f32.mrf.mxu0  ;;  %v1860_v26 = vpop.f32.mrf.mxu1  ;;  %v1925_v31 = vmax.f32 %v1744_v42, 0.0  ;;  %v1927_v58 = vmax.f32 %v1857_v33, 0.0 }
 0x2b7   : > { %v1748_v47 = vadd.f32 %v1747_v49, %v4694_v45  ;;  %v1861_v15 = vadd.f32 %v1860_v26, %v4696_v35  ;;  %2243 = vmatprep.mubr.bf16.mxu0 %v1966_v23  ;;  %2340 = vmatprep.mubr.bf16.mxu1 %v1968_v2  ;;  %v1926_v17 = vmax.f32 %v1746_v25, 0.0  ;;  %v1928_v37 = vmax.f32 %v1859_v46, 0.0 }
 0x2b8   : > { %v1749_v34 = vpop.f32.mrf.mxu0  ;;  %v1862_v41 = vpop.f32.mrf.mxu1  ;;  %2244 = vmatmul.mubr.bf16.gmra.mxu0 %v1965_v59  ;;  %2341 = vmatmul.mubr.bf16.gmra.mxu1 %v1967_v60 }
 0x2b9   : > { %v1750_v8 = vadd.f32 %v1749_v34, %v4688_v13  ;;  %v1863_v3 = vadd.f32 %v1862_v41, %v4690_v14  ;;  %v1929_v38 = vmax.f32 %v1748_v47, 0.0  ;;  %v1931_v61 = vmax.f32 %v1861_v15, 0.0 }
 0x2ba   : > { %v1753_v4 = vpop.f32.mrf.mxu0  ;;  %v1866_v5 = vpop.f32.mrf.mxu1 }
 0x2bb   : > { %v1930_v29 = vmax.f32 %v1750_v8, 0.0  ;;  %v1932_v24 = vmax.f32 %v1863_v3, 0.0  ;;  %v1969_v56 = vpack.c.bf16 %v1929_v38, %v1925_v31  ;;  %v1971_v51 = vpack.c.bf16 %v1931_v61, %v1927_v58  ;;  %v2466_v31 = vld [vmem:[%s5049_s17 + $0x68] sm:$0xff]  ;;  %v2465_v58 = vld [vmem:[%s5049_s17 + $0x60] sm:$0xff] }
 0x2bc   : > { %v1755_v10 = vpop.f32.mrf.mxu0  ;;  %v1868_v18 = vpop.f32.mrf.mxu1  ;;  %v1754_v50 = vadd.f32 %v1753_v4, %v4694_v45  ;;  %v1867_v63 = vadd.f32 %v1866_v5, %v4696_v35 }
 0x2bd   : > { %v1970_v44 = vpack.c.bf16 %v1930_v29, %v1926_v17  ;;  %v1972_v55 = vpack.c.bf16 %v1932_v24, %v1928_v37  ;;  %v1756_v0 = vadd.f32 %v1755_v10, %v4688_v13  ;;  %v1869_v36 = vadd.f32 %v1868_v18, %v4690_v14  ;;  %v2464_v10 = vld [vmem:[%s5049_s17 + $0x58] sm:$0xff]  ;;  %v1466_v18 = vld [vmem:[%s5047_s15] sm:$0x1] }
 0x2be   : > { %v1757_v40 = vpop.f32.mrf.mxu0  ;;  %v1870_v28 = vpop.f32.mrf.mxu1  ;;  %v1933_v39 = vmax.f32 %v1754_v50, 0.0  ;;  %v1935_v62 = vmax.f32 %v1867_v63, 0.0 }
 0x2bf   : > { %v1758_v48 = vadd.f32 %v1757_v40, %v4694_v45  ;;  %v1871_v30 = vadd.f32 %v1870_v28, %v4696_v35  ;;  %2251 = vmatprep.mubr.bf16.mxu0 %v1970_v44  ;;  %2348 = vmatprep.mubr.bf16.mxu1 %v1972_v55  ;;  %v1934_v19 = vmax.f32 %v1756_v0, 0.0  ;;  %v1936_v20 = vmax.f32 %v1869_v36, 0.0  ;;  %v1467_v44 = vld [vmem:[%s5048_s16] sm:$0x1] }
 0x2c0   : > { %v1759_v12 = vpop.f32.mrf.mxu0  ;;  %v1872_v16 = vpop.f32.mrf.mxu1  ;;  %2252 = vmatmul.mubr.bf16.gmra.mxu0 %v1969_v56  ;;  %2349 = vmatmul.mubr.bf16.gmra.mxu1 %v1971_v51  ;;  %v1468_v55 = vmul.f32 %v1467_v44, %v1466_v18  ;;  %v1465_v56 = vld [vmem:[%s5046_s14] sm:$0x1] }
 0x2c1   : > { %v1760_v1 = vadd.f32 %v1759_v12, %v4688_v13  ;;  %v1873_v7 = vadd.f32 %v1872_v16, %v4690_v14  ;;  %v1937_v6 = vmax.f32 %v1758_v48, 0.0  ;;  %v1939_v52 = vmax.f32 %v1871_v30, 0.0 }
 0x2c2   : > { %v1763_v21 = vpop.f32.mrf.mxu0  ;;  %v1876_v11 = vpop.f32.mrf.mxu1  ;;  %v1469_v51 = vadd.f32 %v1468_v55, %v1465_v56 }
 0x2c3   : > { %v1938_v22 = vmax.f32 %v1760_v1, 0.0  ;;  %v1940_v43 = vmax.f32 %v1873_v7, 0.0  ;;  %v1973_v23 = vpack.c.bf16 %v1937_v6, %v1933_v39  ;;  %v1975_v2 = vpack.c.bf16 %v1939_v52, %v1935_v62 }
 0x2c4   : > { %v1765_v9 = vpop.f32.mrf.mxu0  ;;  %v1878_v53 = vpop.f32.mrf.mxu1  ;;  %v1764_v47 = vadd.f32 %v1763_v21, %v4694_v45  ;;  %v1877_v15 = vadd.f32 %v1876_v11, %v4696_v35  ;;  %v4788_v28 = vrot.slane %v1469_v51, %v1481_v27  ;;  %v2455_v51 = vld [vmem:[%s5049_s17 + $0x10] sm:$0xff] }
 0x2c5   : > { %v1974_v54 = vpack.c.bf16 %v1938_v22, %v1934_v19  ;;  %v1976_v32 = vpack.c.bf16 %v1940_v43, %v1936_v20  ;;  %v1766_v59 = vadd.f32 %v1765_v9, %v4688_v13  ;;  %v1879_v49 = vadd.f32 %v1878_v53, %v4690_v14 }
 0x2c6   : > { %v1767_v60 = vpop.f32.mrf.mxu0  ;;  %v1880_v25 = vpop.f32.mrf.mxu1  ;;  %v1941_v17 = vmax.f32 %v1764_v47, 0.0  ;;  %v1943_v37 = vmax.f32 %v1877_v15, 0.0  ;;  %v2463_v15 = vld [vmem:[%s5049_s17 + $0x50] sm:$0xff] }
 0x2c7   : > { %v1768_v26 = vadd.f32 %v1767_v60, %v4694_v45  ;;  %v1881_v46 = vadd.f32 %v1880_v25, %v4696_v35  ;;  %2259 = vmatprep.mubr.bf16.mxu0 %v1974_v54  ;;  %2356 = vmatprep.mubr.bf16.mxu1 %v1976_v32  ;;  %v1942_v38 = vmax.f32 %v1766_v59, 0.0  ;;  %v1944_v61 = vmax.f32 %v1879_v49, 0.0 }
 0x2c8   : > { %v1769_v42 = vpop.f32.mrf.mxu0  ;;  %v1882_v33 = vpop.f32.mrf.mxu1  ;;  %2260 = vmatmul.mubr.bf16.gmra.mxu0 %v1973_v23  ;;  %2357 = vmatmul.mubr.bf16.gmra.mxu1 %v1975_v2 }
 0x2c9   : > { %v1770_v34 = vadd.f32 %v1769_v42, %v4688_v13  ;;  %v1883_v41 = vadd.f32 %v1882_v33, %v4690_v14  ;;  %v1945_v8 = vmax.f32 %v1768_v26, 0.0  ;;  %v1947_v3 = vmax.f32 %v1881_v46, 0.0  ;;  %v2468_v13 = vld [vmem:[%s5049_s17 + $0x78] sm:$0xff]  ;;  %v2467_v14 = vld [vmem:[%s5049_s17 + $0x70] sm:$0xff] }
 0x2ca   : > { %3083 = vmatprep.subr.mxu0 %v2468_v13  ;;  %3139 = vmatprep.subr.mxu1 %v2468_v13 }
 0x2cb   : > { %v1946_v4 = vmax.f32 %v1770_v34, 0.0  ;;  %v1948_v5 = vmax.f32 %v1883_v41, 0.0  ;;  %v1977_v24 = vpack.c.bf16 %v1945_v8, %v1941_v17  ;;  %v1979_v35 = vpack.c.bf16 %v1947_v3, %v1943_v37  ;;  %3084 = vmatpush3.msra.mxu0 %v2468_v13  ;;  %3155 = vmatpush3.msra.mxu1 %v2468_v13  ;;  %v2462_v34 = vld [vmem:[%s5049_s17 + $0x48] sm:$0xff]  ;;  %v2461_v3 = vld [vmem:[%s5049_s17 + $0x40] sm:$0xff]  ;;  %v2459_v37 = vld [vmem:[%s5049_s17 + $0x30] sm:$0xff] }
 0x2cc   : > { %3085 = vmatprep.subr.mxu0 %v2467_v14  ;;  %3140 = vmatprep.subr.mxu1 %v2467_v14 }
 0x2cd   : > { %v1978_v29 = vpack.c.bf16 %v1946_v4, %v1942_v38  ;;  %v1980_v45 = vpack.c.bf16 %v1948_v5, %v1944_v61  ;;  %3086 = vmatpush3.msra.mxu0 %v2467_v14  ;;  %3156 = vmatpush3.msra.mxu1 %v2467_v14  ;;  %v2460_v4 = vld [vmem:[%s5049_s17 + $0x38] sm:$0xff]  ;;  %v2457_v14 = vld [vmem:[%s5049_s17 + $0x20] sm:$0xff] }
 0x2ce   : > { %3087 = vmatprep.subr.mxu0 %v2466_v31  ;;  %3141 = vmatprep.subr.mxu1 %v2466_v31 }
 0x2cf   : > { %2267 = vmatprep.mubr.bf16.mxu0 %v1978_v29  ;;  %2364 = vmatprep.mubr.bf16.mxu1 %v1980_v45 }
 0x2d0   : > { %2268 = vmatmul.mubr.bf16.gmra.mxu0 %v1977_v24  ;;  %2365 = vmatmul.mubr.bf16.gmra.mxu1 %v1979_v35  ;;  %v2458_v24 = vld [vmem:[%s5049_s17 + $0x28] sm:$0xff] }
 0x2d1   : > { %3088 = vmatpush3.msra.mxu0 %v2466_v31  ;;  %3157 = vmatpush3.msra.mxu1 %v2466_v31 }
 0x2d2   : > { %3089 = vmatprep.subr.mxu0 %v2465_v58  ;;  %3142 = vmatprep.subr.mxu1 %v2465_v58 }
 0x2d3   : > { %3090 = vmatpush3.msra.mxu0 %v2465_v58  ;;  %3158 = vmatpush3.msra.mxu1 %v2465_v58 }
 0x2d4   : > { %3091 = vmatprep.subr.mxu0 %v2464_v10  ;;  %3143 = vmatprep.subr.mxu1 %v2464_v10 }
 0x2d5   : > { %3092 = vmatpush3.msra.mxu0 %v2464_v10  ;;  %3159 = vmatpush3.msra.mxu1 %v2464_v10  ;;  %v2456_v10 = vld [vmem:[%s5049_s17 + $0x18] sm:$0xff] }
 0x2d6   : > { %3093 = vmatprep.subr.mxu0 %v2463_v15  ;;  %3144 = vmatprep.subr.mxu1 %v2463_v15 }
 0x2d7   : > { %3094 = vmatpush3.msra.mxu0 %v2463_v15  ;;  %3160 = vmatpush3.msra.mxu1 %v2463_v15 }
 0x2d8   : > { %3095 = vmatprep.subr.mxu0 %v2462_v34  ;;  %3145 = vmatprep.subr.mxu1 %v2462_v34 }
 0x2d9   : > { %3096 = vmatpush3.msra.mxu0 %v2462_v34  ;;  %3161 = vmatpush3.msra.mxu1 %v2462_v34 }
 0x2da   : > { %3097 = vmatprep.subr.mxu0 %v2461_v3  ;;  %3146 = vmatprep.subr.mxu1 %v2461_v3 }
 0x2db   : > { %3098 = vmatpush3.msra.mxu0 %v2461_v3  ;;  %3162 = vmatpush3.msra.mxu1 %v2461_v3 }
 0x2dc   : > { %3099 = vmatprep.subr.mxu0 %v2460_v4  ;;  %3147 = vmatprep.subr.mxu1 %v2460_v4 }
 0x2dd   : > { %3100 = vmatpush3.msra.mxu0 %v2460_v4  ;;  %3163 = vmatpush3.msra.mxu1 %v2460_v4 }
 0x2de   : > { %3101 = vmatprep.subr.mxu0 %v2459_v37  ;;  %3148 = vmatprep.subr.mxu1 %v2459_v37 }
 0x2df   : > { %3102 = vmatpush3.msra.mxu0 %v2459_v37  ;;  %3164 = vmatpush3.msra.mxu1 %v2459_v37 }
 0x2e0   : > { %3103 = vmatprep.subr.mxu0 %v2458_v24  ;;  %3149 = vmatprep.subr.mxu1 %v2458_v24 }
 0x2e1   : > { %3104 = vmatpush3.msra.mxu0 %v2458_v24  ;;  %3165 = vmatpush3.msra.mxu1 %v2458_v24 }
 0x2e2   : > { %3105 = vmatprep.subr.mxu0 %v2457_v14  ;;  %3150 = vmatprep.subr.mxu1 %v2457_v14 }
 0x2e3   : > { %3106 = vmatpush3.msra.mxu0 %v2457_v14  ;;  %3166 = vmatpush3.msra.mxu1 %v2457_v14 }
 0x2e4   : > { %3107 = vmatprep.subr.mxu0 %v2456_v10  ;;  %3151 = vmatprep.subr.mxu1 %v2456_v10 }
 0x2e5   : > { %3108 = vmatpush3.msra.mxu0 %v2456_v10  ;;  %3167 = vmatpush3.msra.mxu1 %v2456_v10 }
 0x2e6   : > { %3109 = vmatprep.subr.mxu0 %v2455_v51  ;;  %3152 = vmatprep.subr.mxu1 %v2455_v51 }
 0x2e7   : > { %3110 = vmatpush3.msra.mxu0 %v2455_v51  ;;  %3168 = vmatpush3.msra.mxu1 %v2455_v51 }
 0x358   : > { %v2875_v0 = vpop.f32.mrf.mxu0  ;;  %v2939_v40 = vpop.f32.mrf.mxu1 }
 0x35a   : > { %v2876_v36 = vpop.f32.mrf.mxu0  ;;  %v2940_v48 = vpop.f32.mrf.mxu1 }
 0x35b   : > { %v2877_v30 = vadd.f32 %v2876_v36, %v2875_v0  ;;  %v2941_v16 = vadd.f32 %v2940_v48, %v2939_v40  ;;  %v2454_v0 = vld [vmem:[%s5049_s17 + $0x8] sm:$0xff] }
 0x35c   : > { %v2878_v50 = vpop.f32.mrf.mxu0  ;;  %v2942_v63 = vpop.f32.mrf.mxu1  ;;  %3111 = vmatprep.subr.mxu0 %v2454_v0  ;;  %3153 = vmatprep.subr.mxu1 %v2454_v0 }
 0x35d   : > { %v2214_v12 = vadd.f32 %v2877_v30, %v4788_v28  ;;  %3112 = vmatpush3.msra.mxu0 %v2454_v0  ;;  %3169 = vmatpush3.msra.mxu1 %v2454_v0 }
 0x35e   : > { %v2879_v1 = vpop.f32.mrf.mxu0  ;;  %v2943_v7 = vpop.f32.mrf.mxu1 }
 0x35f   : > { %v2880_v6 = vadd.f32 %v2879_v1, %v2878_v50  ;;  %v4791_v52 = vadd.f32 %v2941_v16, %v2214_v12  ;;  %v2944_v57 = vadd.f32 %v2943_v7, %v2942_v63  ;;  %v2453_v50 = vld [vmem:[%s5049_s17] sm:$0xff] }
 0x360   : > { %v2881_v21 = vpop.f32.mrf.mxu0  ;;  %v2945_v11 = vpop.f32.mrf.mxu1  ;;  %3113 = vmatprep.subr.mxu0 %v2453_v50  ;;  %3154 = vmatprep.subr.mxu1 %v2453_v50 }
 0x361   : > { %v2217_v19 = vadd.f32 %v2880_v6, %v4788_v28  ;;  %2373 = vmax.xlane.f32.xlu0 %v4791_v52  ;;  %3114 = vmatpush3.msra.mxu0 %v2453_v50 }
 0x362   : > { %v2882_v27 = vpop.f32.mrf.mxu0  ;;  %v2946_v20 = vpop.f32.mrf.mxu1  ;;  %3170 = vmatpush3.msra.mxu1 %v2453_v50 }
 0x363   : > { %v2883_v22 = vadd.f32 %v2882_v27, %v2881_v21  ;;  %v4795_v43 = vadd.f32 %v2944_v57, %v2217_v19  ;;  %v2947_v53 = vadd.f32 %v2946_v20, %v2945_v11 }
 0x364   : > { %v2884_v39 = vpop.f32.mrf.mxu0  ;;  %v2948_v62 = vpop.f32.mrf.mxu1 }
 0x365   : > { %v2222_v9 = vadd.f32 %v2883_v22, %v4788_v28  ;;  %2375 = vmax.xlane.f32.xlu1 %v4795_v43 }
 0x366   : > { %v2885_v54 = vpop.f32.mrf.mxu0  ;;  %v2949_v32 = vpop.f32.mrf.mxu1 }
 0x367   : > { %v2886_v23 = vadd.f32 %v2885_v54, %v2884_v39  ;;  %v4799_v2 = vadd.f32 %v2947_v53, %v2222_v9  ;;  %v2950_v49 = vadd.f32 %v2949_v32, %v2948_v62 }
 0x368   : > { %v2887_v59 = vpop.f32.mrf.mxu0  ;;  %v4801_v60 = vpop.f32.mrf.mxu1 }
 0x369   : > { %v2225_v25 = vadd.f32 %v2886_v23, %v4788_v28  ;;  %2377 = vmax.xlane.f32.xlu0 %v4799_v2 }
 0x36a   : > { %v2888_v26 = vpop.f32.mrf.mxu0  ;;  %v4805_v46 = vpop.f32.mrf.mxu1 }
 0x36b   : > { %v4807_v47 = vadd.f32 %v2950_v49, %v2225_v25  ;;  %v2889_v55 = vadd.f32 %v2888_v26, %v2887_v59  ;;  %v2953_v19 = vadd.f32 %v4805_v46, %v4801_v60 }
 0x36c   : > { %v4812_v42 = vpop.f32.mrf.mxu0  ;;  %v4814_v33 = vpop.f32.mrf.mxu1 }
 0x36d   : > { %2379 = vmax.xlane.f32.xlu0 %v4807_v47  ;;  %v2230_v1 = vadd.f32 %v2889_v55, %v4788_v28 }
 0x36e   : > { %v2891_v41 = vpop.f32.mrf.mxu0  ;;  %v4820_v8 = vpop.f32.mrf.mxu1 }
 0x36f   : > { %v2892_v63 = vadd.f32 %v2891_v41, %v4812_v42  ;;  %v4879_v54 = vadd.f32 %v2953_v19, %v2230_v1  ;;  %v2956_v32 = vadd.f32 %v4820_v8, %v4814_v33 }
 0x370   : > { %v4825_v38 = vpop.f32.mrf.mxu0  ;;  %v4827_v61 = vpop.f32.mrf.mxu1 }
 0x371   : > { %v2233_v20 = vadd.f32 %v2892_v63, %v4788_v28 }
 0x372   : > { %v4832_v5 = vpop.f32.mrf.mxu0  ;;  %v4834_v17 = vpop.f32.mrf.mxu1 }
 0x373   : > { %v2895_v62 = vadd.f32 %v4832_v5, %v4825_v38  ;;  %v4886_v46 = vadd.f32 %v2956_v32, %v2233_v20  ;;  %v2959_v3 = vadd.f32 %v4834_v17, %v4827_v61 }
 0x374   : > { %v4839_v29 = vpop.f32.mrf.mxu0  ;;  %v4841_v45 = vpop.f32.mrf.mxu1 }
 0x375   : > { %v2238_v15 = vadd.f32 %v2895_v62, %v4788_v28 }
 0x376   : > { %v4846_v35 = vpop.f32.mrf.mxu0  ;;  %v4848_v13 = vpop.f32.mrf.mxu1 }
 0x377   : > { %v2898_v42 = vadd.f32 %v4846_v35, %v4839_v29  ;;  %v4901_v14 = vadd.f32 %v2959_v3, %v2238_v15  ;;  %v2962_v61 = vadd.f32 %v4848_v13, %v4841_v45 }
 0x378   : > { %v2899_v31 = vpop.f32.mrf.mxu0  ;;  %v2963_v58 = vpop.f32.mrf.mxu1 }
 0x379   : > { %v2241_v24 = vadd.f32 %v2898_v42, %v4788_v28 }
 0x37a   : > { %v2900_v18 = vpop.f32.mrf.mxu0  ;;  %v2964_v44 = vpop.f32.mrf.mxu1 }
 0x37b   : > { %v2901_v56 = vadd.f32 %v2900_v18, %v2899_v31  ;;  %v2965_v30 = vadd.f32 %v2964_v44, %v2963_v58  ;;  %v4910_v51 = vadd.f32 %v2962_v61, %v2241_v24 }
 0x37c   : > { %v2902_v40 = vpop.f32.mrf.mxu0  ;;  %v2966_v36 = vpop.f32.mrf.mxu1 }
 0x37d   : > { %v2246_v48 = vadd.f32 %v2901_v56, %v4788_v28 }
 0x37e   : > { %v2903_v12 = vpop.f32.mrf.mxu0  ;;  %v2967_v16 = vpop.f32.mrf.mxu1 }
 0x37f   : > { %v2904_v7 = vadd.f32 %v2903_v12, %v2902_v40  ;;  %v4868_v6 = vadd.f32 %v2965_v30, %v2246_v48  ;;  %v2968_v27 = vadd.f32 %v2967_v16, %v2966_v36 }
 0x380   : > { %v2905_v21 = vpop.f32.mrf.mxu0  ;;  %v2969_v11 = vpop.f32.mrf.mxu1 }
 0x381   : > { %v2249_v57 = vadd.f32 %v2904_v7, %v4788_v28  ;;  %2389 = vmax.xlane.f32.xlu0 %v4868_v6 }
 0x382   : > { %v2906_v22 = vpop.f32.mrf.mxu0  ;;  %v2970_v39 = vpop.f32.mrf.mxu1 }
 0x383   : > { %v2907_v9 = vadd.f32 %v2906_v22, %v2905_v21  ;;  %v4877_v53 = vadd.f32 %v2968_v27, %v2249_v57  ;;  %v2971_v25 = vadd.f32 %v2970_v39, %v2969_v11 }
 0x384   : > { %v2908_v23 = vpop.f32.mrf.mxu0  ;;  %v2972_v59 = vpop.f32.mrf.mxu1 }
 0x385   : > { %v2254_v60 = vadd.f32 %v2907_v9, %v4788_v28  ;;  %2391 = vmax.xlane.f32.xlu1 %v4877_v53  ;;  %2381 = vmax.xlane.f32.xlu0 %v4879_v54 }
 0x386   : > { %v2909_v49 = vpop.f32.mrf.mxu0  ;;  %v2973_v26 = vpop.f32.mrf.mxu1 }
 0x387   : > { %v2910_v34 = vadd.f32 %v2909_v49, %v2908_v23  ;;  %v4891_v33 = vadd.f32 %v2971_v25, %v2254_v60  ;;  %v2974_v4 = vadd.f32 %v2973_v26, %v2972_v59 }
 0x388   : > { %v2911_v41 = vpop.f32.mrf.mxu0  ;;  %v2975_v8 = vpop.f32.mrf.mxu1 }
 0x389   : > { %v2257_v38 = vadd.f32 %v2910_v34, %v4788_v28  ;;  %2393 = vmax.xlane.f32.xlu1 %v4891_v33  ;;  %2383 = vmax.xlane.f32.xlu0 %v4886_v46 }
 0x38a   : > { %v2912_v5 = vpop.f32.mrf.mxu0  ;;  %v2976_v37 = vpop.f32.mrf.mxu1 }
 0x38b   : > { %v2913_v29 = vadd.f32 %v2912_v5, %v2911_v41  ;;  %v4899_v35 = vadd.f32 %v2974_v4, %v2257_v38  ;;  %v2977_v10 = vadd.f32 %v2976_v37, %v2975_v8 }
 0x38c   : > { %v2914_v31 = vpop.f32.mrf.mxu0  ;;  %v2978_v58 = vpop.f32.mrf.mxu1 }
 0x38d   : > { %v2262_v17 = vadd.f32 %v2913_v29, %v4788_v28  ;;  %2395 = vmax.xlane.f32.xlu1 %v4899_v35  ;;  %2385 = vmax.xlane.f32.xlu0 %v4901_v14 }
 0x38e   : > { %v2915_v18 = vpop.f32.mrf.mxu0  ;;  %v2979_v44 = vpop.f32.mrf.mxu1 }
 0x38f   : > { %v2916_v55 = vadd.f32 %v2915_v18, %v2914_v31  ;;  %v4908_v56 = vadd.f32 %v2977_v10, %v2262_v17  ;;  %v2980_v48 = vadd.f32 %v2979_v44, %v2978_v58 }
 0x390   : > { %v2917_v0 = vpop.f32.mrf.mxu0  ;;  %v2981_v40 = vpop.f32.mrf.mxu1 }
 0x391   : > { %v2265_v36 = vadd.f32 %v2916_v55, %v4788_v28  ;;  %2397 = vmax.xlane.f32.xlu1 %v4908_v56  ;;  %2387 = vmax.xlane.f32.xlu0 %v4910_v51 }
 0x392   : > { %v2918_v45 = vpop.f32.mrf.mxu0  ;;  %v2982_v13 = vpop.f32.mrf.mxu1 }
 0x393   : > { %v2919_v30 = vadd.f32 %v2918_v45, %v2917_v0  ;;  %v4915_v50 = vadd.f32 %v2980_v48, %v2265_v36  ;;  %v2983_v1 = vadd.f32 %v2982_v13, %v2981_v40 }
 0x394   : > { %v2920_v63 = vpop.f32.mrf.mxu0  ;;  %v2984_v12 = vpop.f32.mrf.mxu1 }
 0x395   : > { %v2270_v16 = vadd.f32 %v2919_v30, %v4788_v28  ;;  %2399 = vmax.xlane.f32.xlu1 %v4915_v50 }
 0x396   : > { %v2921_v7 = vpop.f32.mrf.mxu0  ;;  %v2985_v21 = vpop.f32.mrf.mxu1 }
 0x397   : > { %v2922_v11 = vadd.f32 %v2921_v7, %v2920_v63  ;;  %v4919_v19 = vadd.f32 %v2983_v1, %v2270_v16  ;;  %v2986_v27 = vadd.f32 %v2985_v21, %v2984_v12 }
 0x399   : > { %v2273_v57 = vadd.f32 %v2922_v11, %v4788_v28  ;;  %2401 = vmax.xlane.f32.xlu1 %v4919_v19 }
 0x39b   : > { %v4923_v20 = vadd.f32 %v2986_v27, %v2273_v57 }
 0x39d   : > { %2403 = vmax.xlane.f32.xlu1 %v4923_v20 }
 0x3ea   : > { %v2374_v22 = vpop.xlane.xlu0 %2373 }
 0x3eb   : > { %v2405_v39 = vsub.f32 %v4791_v52, %v2374_v22 }
 0x3ed   : > { %v2421_v62 = vmul.f32 1.442695, %v2405_v39 }
 0x3ee   : > { %v2376_v9 = vpop.xlane.xlu1 %2375 }
 0x3ef   : > { %3196 = vpow2.f32 %v2421_v62  ;;  %v2406_v32 = vsub.f32 %v4795_v43, %v2376_v9 }
 0x3f1   : > { %v2423_v23 = vmul.f32 1.442695, %v2406_v32 }
 0x3f2   : > { %v2378_v59 = vpop.xlane.xlu0 %2377 }
 0x3f3   : > { %3198 = vpow2.f32 %v2423_v23  ;;  %v2407_v28 = vsub.f32 %v4799_v2, %v2378_v59 }
 0x3f5   : > { %v2425_v60 = vmul.f32 1.442695, %v2407_v28 }
 0x3f6   : > { %v2380_v25 = vpop.xlane.xlu0 %2379 }
 0x3f7   : > { %3200 = vpow2.f32 %v2425_v60  ;;  %v2408_v49 = vsub.f32 %v4807_v47, %v2380_v25 }
 0x3f9   : > { %v2427_v26 = vmul.f32 1.442695, %v2408_v49 }
 0x3fb   : > { %3202 = vpow2.f32 %v2427_v26 }
 0x3fc   : > { %v4930_v15 = vpop.eup %3196 }
 0x3fd   : > { %3115 = vmatprep.mubr.f32.mxu0 %v4930_v15 }
 0x400   : > { %v4933_v52 = vpop.eup %3198 }
 0x401   : > { %3116 = vmatmul.mubr.f32.vlgmr.msra.gmra.mxu0 %v4933_v52 }
 0x404   : > { %v4936_v43 = vpop.eup %3200 }
 0x405   : > { %3118 = vmatprep.mubr.f32.mxu0 %v4936_v43 }
 0x408   : > { %v4939_v2 = vpop.eup %3202 }
 0x409   : > { %3119 = vmatmul.mubr.f32.gmra.mxu0 %v4939_v2 }
 0x40a   : > { %v2390_v42 = vpop.xlane.xlu0 %2389 }
 0x40b   : > { %v2413_v47 = vsub.f32 %v4868_v6, %v2390_v42 }
 0x40d   : > { %v2437_v34 = vmul.f32 1.442695, %v2413_v47 }
 0x40e   : > { %v2392_v41 = vpop.xlane.xlu1 %2391  ;;  %v2382_v8 = vpop.xlane.xlu0 %2381 }
 0x40f   : > { %3204 = vpow2.f32 %v2437_v34  ;;  %v2414_v3 = vsub.f32 %v4877_v53, %v2392_v41  ;;  %v2409_v38 = vsub.f32 %v4879_v54, %v2382_v8 }
 0x411   : > { %v2439_v4 = vmul.f32 1.442695, %v2414_v3  ;;  %v2429_v5 = vmul.f32 1.442695, %v2409_v38 }
 0x412   : > { %v2394_v37 = vpop.xlane.xlu1 %2393  ;;  %v2384_v24 = vpop.xlane.xlu0 %2383 }
 0x413   : > { %3206 = vpow2.f32 %v2439_v4  ;;  %v2415_v29 = vsub.f32 %v4891_v33, %v2394_v37  ;;  %v2410_v31 = vsub.f32 %v4886_v46, %v2384_v24 }
 0x414   : > { %3208 = vpow2.f32 %v2429_v5 }
 0x415   : > { %v2441_v58 = vmul.f32 1.442695, %v2415_v29  ;;  %v2431_v6 = vmul.f32 1.442695, %v2410_v31 }
 0x416   : > { %v2396_v61 = vpop.xlane.xlu1 %2395  ;;  %v2386_v17 = vpop.xlane.xlu0 %2385 }
 0x417   : > { %3210 = vpow2.f32 %v2441_v58  ;;  %v2416_v10 = vsub.f32 %v4899_v35, %v2396_v61  ;;  %v2411_v53 = vsub.f32 %v4901_v14, %v2386_v17 }
 0x418   : > { %3212 = vpow2.f32 %v2431_v6 }
 0x419   : > { %v2443_v54 = vmul.f32 1.442695, %v2416_v10  ;;  %v2433_v18 = vmul.f32 1.442695, %v2411_v53 }
 0x41a   : > { %v2398_v44 = vpop.xlane.xlu1 %2397  ;;  %v2388_v55 = vpop.xlane.xlu0 %2387 }
 0x41b   : > { %3214 = vpow2.f32 %v2443_v54  ;;  %v2417_v33 = vsub.f32 %v4908_v56, %v2398_v44  ;;  %v2412_v46 = vsub.f32 %v4910_v51, %v2388_v55 }
 0x41c   : > { %v4951_v0 = vpop.eup %3204  ;;  %3216 = vpow2.f32 %v2433_v18 }
 0x41d   : > { %v2445_v40 = vmul.f32 1.442695, %v2417_v33  ;;  %v2435_v36 = vmul.f32 1.442695, %v2412_v46  ;;  %3127 = vmatprep.mubr.f32.mxu1 %v4951_v0 }
 0x41e   : > { %v2400_v35 = vpop.xlane.xlu1 %2399 }
 0x41f   : > { %3218 = vpow2.f32 %v2445_v40  ;;  %v2418_v14 = vsub.f32 %v4915_v50, %v2400_v35 }
 0x420   : > { %v4955_v48 = vpop.eup %3206  ;;  %3220 = vpow2.f32 %v2435_v36 }
 0x421   : > { %v4957_v45 = vpop.eup %3208  ;;  %v2447_v13 = vmul.f32 1.442695, %v2418_v14  ;;  %3128 = vmatmul.mubr.f32.vlgmr.msra.gmra.mxu1 %v4955_v48 }
 0x422   : > { %3121 = vmatprep.mubr.f32.mxu0 %v4957_v45  ;;  %v2402_v56 = vpop.xlane.xlu1 %2401 }
 0x423   : > { %3222 = vpow2.f32 %v2447_v13  ;;  %v2419_v51 = vsub.f32 %v4919_v19, %v2402_v56 }
 0x424   : > { %v4962_v30 = vpop.eup %3210 }
 0x425   : > { %v4964_v63 = vpop.eup %3212  ;;  %v2449_v12 = vmul.f32 1.442695, %v2419_v51  ;;  %3130 = vmatprep.mubr.f32.mxu1 %v4962_v30 }
 0x426   : > { %3122 = vmatmul.mubr.f32.gmra.mxu0 %v4964_v63  ;;  %v2404_v50 = vpop.xlane.xlu1 %2403 }
 0x427   : > { %3224 = vpow2.f32 %v2449_v12  ;;  %v2420_v16 = vsub.f32 %v4923_v20, %v2404_v50 }
 0x428   : > { %v4969_v1 = vpop.eup %3214 }
 0x429   : > { %v4971_v7 = vpop.eup %3216  ;;  %v2451_v21 = vmul.f32 1.442695, %v2420_v16  ;;  %3131 = vmatmul.mubr.f32.gmra.mxu1 %v4969_v1 }
 0x42a   : > { %3124 = vmatprep.mubr.f32.mxu0 %v4971_v7 }
 0x42b   : > { %3226 = vpow2.f32 %v2451_v21 }
 0x42c   : > { %v4975_v11 = vpop.eup %3218 }
 0x42d   : > { %v4977_v19 = vpop.eup %3220  ;;  %3133 = vmatprep.mubr.f32.mxu1 %v4975_v11 }
 0x42e   : > { %3125 = vmatmul.mubr.f32.gmra.mxu0 %v4977_v19 }
 0x430   : > { %v4981_v57 = vpop.eup %3222 }
 0x431   : > { %3134 = vmatmul.mubr.f32.gmra.mxu1 %v4981_v57 }
 0x434   : > { %v4984_v27 = vpop.eup %3224 }
 0x435   : > { %3136 = vmatprep.mubr.f32.mxu1 %v4984_v27 }
 0x438   : > { %v4987_v20 = vpop.eup %3226 }
 0x439   : > { %3137 = vmatmul.mubr.f32.gmra.mxu1 %v4987_v20 }
 0x4c1   : > { %v3117_v22 = vpop.f32.mrf.mxu0 }
 0x4c2   : > { %v2615_v39 = vmax.f32 %v3117_v22, 1e-30 }
 0x4c3   : > { %v2535_v62 = vpop.f32.mrf.mxu0 }
 0x4c4   : > { %3228 = vrcp.f32 %v2615_v39  ;;  %v2614_v9 = vmax.f32 %v2535_v62, 1e-30 }
 0x4c6   : > { %3230 = vrcp.f32 %v2614_v9 }
 0x4c9   : > { %v3120_v32 = vpop.f32.mrf.mxu0 }
 0x4ca   : > { %v2617_v23 = vmax.f32 %v3120_v32, 1e-30 }
 0x4cb   : > { %v2545_v59 = vpop.f32.mrf.mxu0 }
 0x4cc   : > { %3232 = vrcp.f32 %v2617_v23  ;;  %v2616_v28 = vmax.f32 %v2545_v59, 1e-30 }
 0x4ce   : > { %3234 = vrcp.f32 %v2616_v28 }
 0x4d1   : > { %v3229_v60 = vpop.eup %3228 }
 0x4d2   : > { %v2647_v25 = vmul.f32 %v3229_v60, %v4933_v52 }
 0x4d3   : > { %v3231_v49 = vpop.eup %3230 }
 0x4d4   : > { %2663 = vst [vmem:[%s4995_s25 + $0x8] sm:$0xff] %v2647_v25  ;;  %v2646_v26 = vmul.f32 %v3231_v49, %v4930_v15 }
 0x4d6   : > { %2662 = vst [vmem:[%s4995_s25] sm:$0xff] %v2646_v26 }
 0x4d9   : > { %v3233_v42 = vpop.eup %3232 }
 0x4da   : > { %v2649_v47 = vmul.f32 %v3233_v42, %v4939_v2 }
 0x4db   : > { %v3235_v34 = vpop.eup %3234 }
 0x4dc   : > { %2665 = vst [vmem:[%s4995_s25 + $0x18] sm:$0xff] %v2649_v47  ;;  %v2648_v41 = vmul.f32 %v3235_v34, %v4936_v43 }
 0x4de   : > { %2664 = vst [vmem:[%s4995_s25 + $0x10] sm:$0xff] %v2648_v41 }
 0x4e1   : > { %v3129_v8 = vpop.f32.mrf.mxu1 }
 0x4e2   : > { %v2623_v3 = vmax.f32 %v3129_v8, 1e-30 }
 0x4e3   : > { %v2575_v38 = vpop.f32.mrf.mxu1 }
 0x4e4   : > { %3236 = vrcp.f32 %v2623_v3  ;;  %v2622_v4 = vmax.f32 %v2575_v38, 1e-30 }
 0x4e6   : > { %3238 = vrcp.f32 %v2622_v4  ;;  %v3123_v52 = vpop.f32.mrf.mxu0 }
 0x4e7   : > { %v2619_v5 = vmax.f32 %v3123_v52, 1e-30 }
 0x4e8   : > { %v2555_v37 = vpop.f32.mrf.mxu0 }
 0x4e9   : > { %3240 = vrcp.f32 %v2619_v5  ;;  %v2618_v15 = vmax.f32 %v2555_v37, 1e-30  ;;  %v3132_v24 = vpop.f32.mrf.mxu1 }
 0x4ea   : > { %v2625_v29 = vmax.f32 %v3132_v24, 1e-30 }
 0x4eb   : > { %3242 = vrcp.f32 %v2618_v15  ;;  %v2585_v2 = vpop.f32.mrf.mxu1 }
 0x4ec   : > { %3244 = vrcp.f32 %v2625_v29  ;;  %v2624_v31 = vmax.f32 %v2585_v2, 1e-30 }
 0x4ee   : > { %3246 = vrcp.f32 %v2624_v31  ;;  %v3126_v43 = vpop.f32.mrf.mxu0 }
 0x4ef   : > { %v2621_v58 = vmax.f32 %v3126_v43, 1e-30 }
 0x4f0   : > { %v2565_v6 = vpop.f32.mrf.mxu0 }
 0x4f1   : > { %v3237_v61 = vpop.eup %3236  ;;  %3248 = vrcp.f32 %v2621_v58  ;;  %v2620_v17 = vmax.f32 %v2565_v6, 1e-30  ;;  %v3135_v10 = vpop.f32.mrf.mxu1 }
 0x4f2   : > { %v2655_v53 = vmul.f32 %v3237_v61, %v4955_v48  ;;  %v2627_v54 = vmax.f32 %v3135_v10, 1e-30 }
 0x4f3   : > { %v3239_v18 = vpop.eup %3238  ;;  %3250 = vrcp.f32 %v2620_v17  ;;  %v2595_v44 = vpop.f32.mrf.mxu1 }
 0x4f4   : > { %2671 = vst [vmem:[%s4995_s25 + $0x48] sm:$0xff] %v2655_v53  ;;  %v2654_v55 = vmul.f32 %v3239_v18, %v4951_v0  ;;  %3252 = vrcp.f32 %v2627_v54  ;;  %v2626_v33 = vmax.f32 %v2595_v44, 1e-30 }
 0x4f6   : > { %v3241_v46 = vpop.eup %3240  ;;  %2670 = vst [vmem:[%s4995_s25 + $0x40] sm:$0xff] %v2654_v55  ;;  %3254 = vrcp.f32 %v2626_v33 }
 0x4f7   : > { %v2651_v40 = vmul.f32 %v3241_v46, %v4964_v63 }
 0x4f8   : > { %v3243_v36 = vpop.eup %3242 }
 0x4f9   : > { %v3245_v35 = vpop.eup %3244  ;;  %2667 = vst [vmem:[%s4995_s25 + $0x28] sm:$0xff] %v2651_v40  ;;  %v2650_v14 = vmul.f32 %v3243_v36, %v4957_v45  ;;  %v3138_v48 = vpop.f32.mrf.mxu1 }
 0x4fa   : > { %v2657_v13 = vmul.f32 %v3245_v35, %v4969_v1  ;;  %v2629_v56 = vmax.f32 %v3138_v48, 1e-30 }
 0x4fb   : > { %v3247_v0 = vpop.eup %3246  ;;  %2666 = vst [vmem:[%s4995_s25 + $0x20] sm:$0xff] %v2650_v14  ;;  %v2605_v51 = vpop.f32.mrf.mxu1 }
 0x4fc   : > { %2673 = vst [vmem:[%s4995_s25 + $0x58] sm:$0xff] %v2657_v13  ;;  %v2656_v12 = vmul.f32 %v3247_v0, %v4962_v30  ;;  %3256 = vrcp.f32 %v2629_v56  ;;  %v2628_v63 = vmax.f32 %v2605_v51, 1e-30 }
 0x4fe   : > { %v3249_v50 = vpop.eup %3248  ;;  %2672 = vst [vmem:[%s4995_s25 + $0x50] sm:$0xff] %v2656_v12  ;;  %3258 = vrcp.f32 %v2628_v63 }
 0x4ff   : > { %v2653_v45 = vmul.f32 %v3249_v50, %v4977_v19 }
 0x500   : > { %v3251_v16 = vpop.eup %3250 }
 0x501   : > { %v3253_v1 = vpop.eup %3252  ;;  %2669 = vst [vmem:[%s4995_s25 + $0x38] sm:$0xff] %v2653_v45  ;;  %v2652_v21 = vmul.f32 %v3251_v16, %v4971_v7 }
 0x502   : > { %v2659_v22 = vmul.f32 %v3253_v1, %v4981_v57 }
 0x503   : > { %v3255_v39 = vpop.eup %3254  ;;  %2668 = vst [vmem:[%s4995_s25 + $0x30] sm:$0xff] %v2652_v21 }
 0x504   : > { %2675 = vst [vmem:[%s4995_s25 + $0x68] sm:$0xff] %v2659_v22  ;;  %v2658_v30 = vmul.f32 %v3255_v39, %v4975_v11 }
 0x506   : > { %2674 = vst [vmem:[%s4995_s25 + $0x60] sm:$0xff] %v2658_v30 }
 0x509   : > { %v3257_v62 = vpop.eup %3256 }
 0x50a   : > { %v2661_v9 = vmul.f32 %v3257_v62, %v4987_v20 }
 0x50b   : > { %v3259_v32 = vpop.eup %3258 }
 0x50c   : > { %2677 = vst [vmem:[%s4995_s25 + $0x78] sm:$0xff] %v2661_v9  ;;  %v2660_v19 = vmul.f32 %v3259_v32, %v4984_v27 }
 0x50e   : > { %2676 = vst [vmem:[%s4995_s25 + $0x70] sm:$0xff] %v2660_v19 }
 0x50f PF: > { %s28_s27 = sadd.s32 1, %s3266_s27  }
 0x510   : > { %p25_p4 = scmp.ge.s32.totalorder %s28_s27, 4  }
 0x512   :  { %27 = sbr.rel (!%p25_p4) target bundleno = 4 (0x4), region = 122 }

</bundles_post_ra>
